<compile_context>
chip_gen: v7x
topology: tpu7x:2x2x1
jax: 0.10.0
libtpu: 0.0.40
codegen_flags: <defaults>
</compile_context>

<pallas_src>
import jax
import jax.numpy as jnp
from jax.experimental import pallas as pl
from jax.experimental.pallas import tpu as pltpu

F_PAD = 128   # conv feature channels padded to a full lane width
N_PAD = 128   # fused head output ( [x1 | x2 | x3 | zeros] ) padded to a full lane width


def _make_kernel(H, W, C, D):
    P = H * W
    K = 9 * C

    def kernel(xp_ref, wc_ref, bc_ref, wh_ref, bh_ref, out_ref, patches_ref):
        # xp_ref: [1, H+2, W+2, C] f32 (padded NHWC, one batch element)
        xp = xp_ref[0]                                       # [H+2, W+2, C]

        # ---- im2col in VMEM: 9 shifted static slices -> patches [P, 9C] ----
        for idx in range(9):
            i, j = divmod(idx, 3)
            patches_ref[:, idx * C:(idx + 1) * C] = (
                xp[i:i + H, j:j + W, :].reshape(P, C))

        # ---- resnet_layer: conv as one [P, K] @ [K, F_pad] matmul (bf16 in, f32 acc) ----
        patches = patches_ref[...].astype(jnp.bfloat16)      # [P, K]
        conv = jnp.dot(patches, wc_ref[...],
                       preferred_element_type=jnp.float32)   # [P, F_pad] f32
        conv = jnp.maximum(conv + bc_ref[...], 0.0)          # bias + ReLU in f32
        feat = jnp.sum(conv, axis=0, keepdims=True) * (1.0 / P)   # global avg pool [1, F_pad]

        # ---- fused heads: one lane-dense matmul, columns = [w1 | w2 | w3 | 0] ----
        head = jnp.dot(feat.astype(jnp.bfloat16), wh_ref[...],
                       preferred_element_type=jnp.float32) + bh_ref[...]   # [1, N_pad]
        x1 = head[:, 0:1]                                    # [1, 1]
        x2 = head[:, 1:1 + D]                                # [1, D]
        x3 = head[:, 1 + D:1 + 2 * D]                        # [1, D]

        # ---- x4 = x2 * x3 ; x5 = sum(x4, 1).view(-1,1) ; out = x1 + x5 ----
        res = x1 + jnp.sum(x2 * x3, axis=1, keepdims=True)   # [1, 1]
        out_ref[...] = jnp.broadcast_to(res[:, :, None], out_ref.shape)

    return kernel


def init_params(key, C, F, D):
    """Synthetic logical parameters (f32) for the opaque submodules."""
    ks = jax.random.split(key, 8)
    K = 9 * C
    s = 0.1
    return {
        'wc': jax.random.normal(ks[0], (K, F), jnp.float32) * s,
        'bc': jax.random.normal(ks[1], (1, F), jnp.float32) * s,
        'w1': jax.random.normal(ks[2], (F, 1), jnp.float32) * s,
        'b1': jax.random.normal(ks[3], (1, 1), jnp.float32) * s,
        'w2': jax.random.normal(ks[4], (F, D), jnp.float32) * s,
        'b2': jax.random.normal(ks[5], (1, D), jnp.float32) * s,
        'w3': jax.random.normal(ks[6], (F, D), jnp.float32) * s,
        'b3': jax.random.normal(ks[7], (1, D), jnp.float32) * s,
    }


def pack_params(params):
    """Pad/fuse logical params into lane-dense kernel weights (weights in bf16)."""
    K, F = params['wc'].shape
    D = params['w2'].shape[1]
    assert 1 + 2 * D <= N_PAD and F <= F_PAD

    wc = jnp.zeros((K, F_PAD), jnp.float32).at[:, :F].set(params['wc'])
    bc = jnp.zeros((1, F_PAD), jnp.float32).at[:, :F].set(params['bc'])

    wh = jnp.zeros((F_PAD, N_PAD), jnp.float32)
    wh = wh.at[:F, 0:1].set(params['w1'])
    wh = wh.at[:F, 1:1 + D].set(params['w2'])
    wh = wh.at[:F, 1 + D:1 + 2 * D].set(params['w3'])
    bh = jnp.zeros((1, N_PAD), jnp.float32)
    bh = bh.at[:, 0:1].set(params['b1'])
    bh = bh.at[:, 1:1 + D].set(params['b2'])
    bh = bh.at[:, 1 + D:1 + 2 * D].set(params['b3'])

    return {
        'wc': wc.astype(jnp.bfloat16),
        'bc': bc,
        'wh': wh.astype(jnp.bfloat16),
        'bh': bh,
        'D': D,
        'F': F,
    }


def net_forward(x_nchw, packed):
    B, C, H, W = x_nchw.shape
    K = 9 * C
    P = H * W
    D = packed['D']

    # Cheap layout prep in XLA: NCHW -> NHWC, pad H/W by 1 (for 'same' 3x3 conv).
    x = jnp.transpose(x_nchw.astype(jnp.float32), (0, 2, 3, 1))     # [B, H, W, C]
    xp = jnp.pad(x, ((0, 0), (1, 1), (1, 1), (0, 0)))               # [B, H+2, W+2, C]

    kernel = _make_kernel(H, W, C, D)

    grid_spec = pltpu.PrefetchScalarGridSpec(
        num_scalar_prefetch=0,
        grid=(B,),
        in_specs=[
            # activation stream: advances with the batch grid axis
            pl.BlockSpec((1, H + 2, W + 2, C), lambda b: (b, 0, 0, 0)),
            # weights / biases: constant index maps -> stay resident in VMEM
            pl.BlockSpec((K, F_PAD), lambda b: (0, 0)),
            pl.BlockSpec((1, F_PAD), lambda b: (0, 0)),
            pl.BlockSpec((F_PAD, N_PAD), lambda b: (0, 0)),
            pl.BlockSpec((1, N_PAD), lambda b: (0, 0)),
        ],
        out_specs=pl.BlockSpec((1, 1, N_PAD), lambda b: (b, 0, 0)),
        scratch_shapes=[pltpu.VMEM((P, K), jnp.float32)],            # im2col patches
    )

    out = pl.pallas_call(
        kernel,
        out_shape=jax.ShapeDtypeStruct((B, 1, N_PAD), jnp.float32),
        grid_spec=grid_spec,
        compiler_params=pltpu.CompilerParams(
            dimension_semantics=("parallel",),        # shard batch across TCs (v7x)
            vmem_limit_bytes=32 * 1024 * 1024,        # safe on v5e/v6e/v7x
        ),
    )(xp, packed['wc'], packed['bc'], packed['wh'], packed['bh'])

    return out[:, :, 0]                                              # [B, 1]


# ----------------------------- pure-JAX reference -----------------------------

def _im2col_3x3_same(x_nchw):
    """NCHW -> im2col patches [B, H*W, 9*C] for a 3x3 'same' convolution."""
    B, C, H, W = x_nchw.shape
    x = jnp.transpose(x_nchw, (0, 2, 3, 1))          # NHWC
    xp = jnp.pad(x, ((0, 0), (1, 1), (1, 1), (0, 0)))
    shifts = [xp[:, i:i + H, j:j + W, :] for i in range(3) for j in range(3)]
    patches = jnp.stack(shifts, axis=3)              # [B, H, W, 9, C]
    return patches.reshape(B, H * W, 9 * C)


def net_forward_ref(x_nchw, params):
    """Reference mirroring the kernel's bf16-matmul / f32-accumulate numerics."""
    patches = _im2col_3x3_same(x_nchw).astype(jnp.float32)
    conv = jnp.einsum('bpk,kf->bpf',
                      patches.astype(jnp.bfloat16),
                      params['wc'].astype(jnp.bfloat16),
                      preferred_element_type=jnp.float32)
    conv = jnp.maximum(conv + params['bc'], 0.0)
    feat = jnp.mean(conv, axis=1)                    # [B, F] f32
    fb = feat.astype(jnp.bfloat16)

    def head(w, b):
        return jnp.dot(fb, w.astype(jnp.bfloat16),
                       preferred_element_type=jnp.float32) + b

    x1 = head(params['w1'], params['b1'])
    x2 = head(params['w2'], params['b2'])
    x3 = head(params['w3'], params['b3'])
    x5 = jnp.sum(x2 * x3, axis=1, keepdims=True)
    return x1 + x5


if __name__ == "__main__":
    B, C, H, W = 2, 4, 16, 16          # input  (PyTorch NCHW convention)
    F, D = 32, 32                      # backbone feature dim / head dim

    key = jax.random.PRNGKey(0)
    k_x, k_p = jax.random.split(key)
    x = jax.random.normal(k_x, (B, C, H, W), jnp.float32)
    params = init_params(k_p, C, F, D)
    packed = pack_params(params)

    out = net_forward(x, packed)
    out = jax.block_until_ready(out)

    ref = net_forward_ref(x, params)
    assert out.shape == (B, 1)
    assert jnp.allclose(out, ref, atol=1e-2, rtol=1e-2), (out, ref)

    print("KERNEL_OK")
</pallas_src>

<mosaic_0001>
module attributes {stable_mosaic.version = 11 : i64} {
  func.func @kernel(%arg0: i32, %arg1: memref<1x18x18x4xf32, #tpu.memory_space<vmem>>, %arg2: memref<36x128xbf16, #tpu.memory_space<vmem>>, %arg3: memref<1x128xf32, #tpu.memory_space<vmem>>, %arg4: memref<128x128xbf16, #tpu.memory_space<vmem>>, %arg5: memref<1x128xf32, #tpu.memory_space<vmem>>, %arg6: memref<1x1x128xf32, #tpu.memory_space<vmem>>, %arg7: memref<256x36xf32, #tpu.memory_space<vmem>>) attributes {dimension_semantics = [#tpu.dimension_semantics<parallel>], iteration_bounds = array<i64: 2>, scalar_prefetch = 0 : i64, scratch_operands = 1 : i64, tpu.core_type = #tpu.core_type<tc>, window_params = [{transform_indices = @transform_0, window_bounds = array<i64: 1, 18, 18, 4>}, {pipeline_mode = #tpu.pipeline_mode<synchronous>, transform_indices = @transform_1, window_bounds = array<i64: 36, 128>}, {pipeline_mode = #tpu.pipeline_mode<synchronous>, transform_indices = @transform_2, window_bounds = array<i64: 1, 128>}, {pipeline_mode = #tpu.pipeline_mode<synchronous>, transform_indices = @transform_3, window_bounds = array<i64: 128, 128>}, {pipeline_mode = #tpu.pipeline_mode<synchronous>, transform_indices = @transform_4, window_bounds = array<i64: 1, 128>}, {transform_indices = @transform_5, window_bounds = array<i64: 1, 1, 128>}]} {
    %c0 = arith.constant 0 : index
    %c0_0 = arith.constant 0 : index
    %c0_1 = arith.constant 0 : index
    %c0_2 = arith.constant 0 : index
    %0 = vector.load %arg1[%c0, %c0_0, %c0_1, %c0_2] : memref<1x18x18x4xf32, #tpu.memory_space<vmem>>, vector<1x18x18x4xf32>
    %1 = vector.shape_cast %0 : vector<1x18x18x4xf32> to vector<18x18x4xf32>
    %2 = vector.extract_strided_slice %1 {offsets = [0, 0, 0], sizes = [16, 16, 4], strides = [1, 1, 1]} : vector<18x18x4xf32> to vector<16x16x4xf32>
    %3 = vector.shape_cast %2 : vector<16x16x4xf32> to vector<256x4xf32>
    %c0_3 = arith.constant 0 : index
    %c0_4 = arith.constant 0 : index
    %4 = vector.load %arg7[%c0_3, %c0_4] : memref<256x36xf32, #tpu.memory_space<vmem>>, vector<256x4xf32>
    tpu.vector_store %arg7[%c0_3, %c0_4], %3 {strides = array<i32>} : memref<256x36xf32, #tpu.memory_space<vmem>>, vector<256x4xf32>,
    %5 = vector.extract_strided_slice %1 {offsets = [0, 1, 0], sizes = [16, 16, 4], strides = [1, 1, 1]} : vector<18x18x4xf32> to vector<16x16x4xf32>
    %6 = vector.shape_cast %5 : vector<16x16x4xf32> to vector<256x4xf32>
    %c0_5 = arith.constant 0 : index
    %c4 = arith.constant 4 : index
    %7 = vector.load %arg7[%c0_5, %c4] : memref<256x36xf32, #tpu.memory_space<vmem>>, vector<256x4xf32>
    tpu.vector_store %arg7[%c0_5, %c4], %6 {strides = array<i32>} : memref<256x36xf32, #tpu.memory_space<vmem>>, vector<256x4xf32>,
    %8 = vector.extract_strided_slice %1 {offsets = [0, 2, 0], sizes = [16, 16, 4], strides = [1, 1, 1]} : vector<18x18x4xf32> to vector<16x16x4xf32>
    %9 = vector.shape_cast %8 : vector<16x16x4xf32> to vector<256x4xf32>
    %c0_6 = arith.constant 0 : index
    %c8 = arith.constant 8 : index
    %10 = vector.load %arg7[%c0_6, %c8] : memref<256x36xf32, #tpu.memory_space<vmem>>, vector<256x4xf32>
    tpu.vector_store %arg7[%c0_6, %c8], %9 {strides = array<i32>} : memref<256x36xf32, #tpu.memory_space<vmem>>, vector<256x4xf32>,
    %11 = vector.extract_strided_slice %1 {offsets = [1, 0, 0], sizes = [16, 16, 4], strides = [1, 1, 1]} : vector<18x18x4xf32> to vector<16x16x4xf32>
    %12 = vector.shape_cast %11 : vector<16x16x4xf32> to vector<256x4xf32>
    %c0_7 = arith.constant 0 : index
    %c12 = arith.constant 12 : index
    %13 = vector.load %arg7[%c0_7, %c12] : memref<256x36xf32, #tpu.memory_space<vmem>>, vector<256x4xf32>
    tpu.vector_store %arg7[%c0_7, %c12], %12 {strides = array<i32>} : memref<256x36xf32, #tpu.memory_space<vmem>>, vector<256x4xf32>,
    %14 = vector.extract_strided_slice %1 {offsets = [1, 1, 0], sizes = [16, 16, 4], strides = [1, 1, 1]} : vector<18x18x4xf32> to vector<16x16x4xf32>
    %15 = vector.shape_cast %14 : vector<16x16x4xf32> to vector<256x4xf32>
    %c0_8 = arith.constant 0 : index
    %c16 = arith.constant 16 : index
    %16 = vector.load %arg7[%c0_8, %c16] : memref<256x36xf32, #tpu.memory_space<vmem>>, vector<256x4xf32>
    tpu.vector_store %arg7[%c0_8, %c16], %15 {strides = array<i32>} : memref<256x36xf32, #tpu.memory_space<vmem>>, vector<256x4xf32>,
    %17 = vector.extract_strided_slice %1 {offsets = [1, 2, 0], sizes = [16, 16, 4], strides = [1, 1, 1]} : vector<18x18x4xf32> to vector<16x16x4xf32>
    %18 = vector.shape_cast %17 : vector<16x16x4xf32> to vector<256x4xf32>
    %c0_9 = arith.constant 0 : index
    %c20 = arith.constant 20 : index
    %19 = vector.load %arg7[%c0_9, %c20] : memref<256x36xf32, #tpu.memory_space<vmem>>, vector<256x4xf32>
    tpu.vector_store %arg7[%c0_9, %c20], %18 {strides = array<i32>} : memref<256x36xf32, #tpu.memory_space<vmem>>, vector<256x4xf32>,
    %20 = vector.extract_strided_slice %1 {offsets = [2, 0, 0], sizes = [16, 16, 4], strides = [1, 1, 1]} : vector<18x18x4xf32> to vector<16x16x4xf32>
    %21 = vector.shape_cast %20 : vector<16x16x4xf32> to vector<256x4xf32>
    %c0_10 = arith.constant 0 : index
    %c24 = arith.constant 24 : index
    %22 = vector.load %arg7[%c0_10, %c24] : memref<256x36xf32, #tpu.memory_space<vmem>>, vector<256x4xf32>
    tpu.vector_store %arg7[%c0_10, %c24], %21 {strides = array<i32>} : memref<256x36xf32, #tpu.memory_space<vmem>>, vector<256x4xf32>,
    %23 = vector.extract_strided_slice %1 {offsets = [2, 1, 0], sizes = [16, 16, 4], strides = [1, 1, 1]} : vector<18x18x4xf32> to vector<16x16x4xf32>
    %24 = vector.shape_cast %23 : vector<16x16x4xf32> to vector<256x4xf32>
    %c0_11 = arith.constant 0 : index
    %c28 = arith.constant 28 : index
    %25 = vector.load %arg7[%c0_11, %c28] : memref<256x36xf32, #tpu.memory_space<vmem>>, vector<256x4xf32>
    tpu.vector_store %arg7[%c0_11, %c28], %24 {strides = array<i32>} : memref<256x36xf32, #tpu.memory_space<vmem>>, vector<256x4xf32>,
    %26 = vector.extract_strided_slice %1 {offsets = [2, 2, 0], sizes = [16, 16, 4], strides = [1, 1, 1]} : vector<18x18x4xf32> to vector<16x16x4xf32>
    %27 = vector.shape_cast %26 : vector<16x16x4xf32> to vector<256x4xf32>
    %c0_12 = arith.constant 0 : index
    %c32 = arith.constant 32 : index
    %28 = vector.load %arg7[%c0_12, %c32] : memref<256x36xf32, #tpu.memory_space<vmem>>, vector<256x4xf32>
    tpu.vector_store %arg7[%c0_12, %c32], %27 {strides = array<i32>} : memref<256x36xf32, #tpu.memory_space<vmem>>, vector<256x4xf32>,
    %c0_13 = arith.constant 0 : index
    %c0_14 = arith.constant 0 : index
    %29 = vector.load %arg7[%c0_13, %c0_14] : memref<256x36xf32, #tpu.memory_space<vmem>>, vector<256x36xf32>
    %30 = arith.truncf %29 : vector<256x36xf32> to vector<256x36xbf16>
    %c0_15 = arith.constant 0 : index
    %c0_16 = arith.constant 0 : index
    %31 = vector.load %arg2[%c0_15, %c0_16] : memref<36x128xbf16, #tpu.memory_space<vmem>>, vector<36x128xbf16>
    %cst = arith.constant dense<0.000000e+00> : vector<256x128xf32>
    %32 = tpu.matmul %30, %31, %cst {dimension_numbers = #tpu.dot_dimension_numbers<[1], [0], [0], [1], [0, 0, 1, 1], [], []>} : vector<256x36xbf16>, vector<36x128xbf16>, vector<256x128xf32> -> vector<256x128xf32>
    %c0_17 = arith.constant 0 : index
    %c0_18 = arith.constant 0 : index
    %33 = vector.load %arg3[%c0_17, %c0_18] : memref<1x128xf32, #tpu.memory_space<vmem>>, vector<1x128xf32>
    %34 = vector.broadcast %33 : vector<1x128xf32> to vector<256x128xf32>
    %35 = arith.addf %32, %34 : vector<256x128xf32>
    %cst_19 = arith.constant 0.000000e+00 : f32
    %36 = vector.broadcast %cst_19 : f32 to vector<256x128xf32>
    %37 = arith.maximumf %35, %36 : vector<256x128xf32>
    %cst_20 = arith.constant dense<0.000000e+00> : vector<128xf32>
    %38 = vector.multi_reduction <add>, %37, %cst_20 [0] : vector<256x128xf32> to vector<128xf32>
    %39 = vector.shape_cast %38 : vector<128xf32> to vector<1x128xf32>
    %cst_21 = arith.constant 3.906250e-03 : f32
    %40 = vector.broadcast %cst_21 : f32 to vector<1x128xf32>
    %41 = arith.mulf %39, %40 : vector<1x128xf32>
    %42 = arith.truncf %41 : vector<1x128xf32> to vector<1x128xbf16>
    %c0_22 = arith.constant 0 : index
    %c0_23 = arith.constant 0 : index
    %43 = vector.load %arg4[%c0_22, %c0_23] : memref<128x128xbf16, #tpu.memory_space<vmem>>, vector<128x128xbf16>
    %cst_24 = arith.constant dense<0.000000e+00> : vector<1x128xf32>
    %44 = tpu.matmul %42, %43, %cst_24 {dimension_numbers = #tpu.dot_dimension_numbers<[1], [0], [0], [1], [0, 0, 1, 1], [], []>} : vector<1x128xbf16>, vector<128x128xbf16>, vector<1x128xf32> -> vector<1x128xf32>
    %c0_25 = arith.constant 0 : index
    %c0_26 = arith.constant 0 : index
    %45 = vector.load %arg5[%c0_25, %c0_26] : memref<1x128xf32, #tpu.memory_space<vmem>>, vector<1x128xf32>
    %46 = arith.addf %44, %45 : vector<1x128xf32>
    %47 = vector.extract_strided_slice %46 {offsets = [0, 0], sizes = [1, 1], strides = [1, 1]} : vector<1x128xf32> to vector<1x1xf32>
    %48 = vector.extract_strided_slice %46 {offsets = [0, 1], sizes = [1, 32], strides = [1, 1]} : vector<1x128xf32> to vector<1x32xf32>
    %49 = vector.extract_strided_slice %46 {offsets = [0, 33], sizes = [1, 32], strides = [1, 1]} : vector<1x128xf32> to vector<1x32xf32>
    %50 = arith.mulf %48, %49 : vector<1x32xf32>
    %cst_27 = arith.constant dense<0.000000e+00> : vector<1xf32>
    %51 = vector.multi_reduction <add>, %50, %cst_27 [1] : vector<1x32xf32> to vector<1xf32>
    %52 = vector.shape_cast %51 : vector<1xf32> to vector<1x1xf32>
    %53 = arith.addf %47, %52 : vector<1x1xf32>
    %54 = vector.shape_cast %53 : vector<1x1xf32> to vector<1x1x1xf32>
    %55 = vector.shape_cast %54 : vector<1x1x1xf32> to vector<1x1x1xf32>
    %56 = vector.broadcast %55 : vector<1x1x1xf32> to vector<1x1x128xf32>
    %c0_28 = arith.constant 0 : index
    %c0_29 = arith.constant 0 : index
    %c0_30 = arith.constant 0 : index
    %57 = vector.load %arg6[%c0_28, %c0_29, %c0_30] : memref<1x1x128xf32, #tpu.memory_space<vmem>>, vector<1x1x128xf32>
    tpu.vector_store %arg6[%c0_28, %c0_29, %c0_30], %56 {strides = array<i32>} : memref<1x1x128xf32, #tpu.memory_space<vmem>>, vector<1x1x128xf32>,
    return
  }
  func.func @transform_0(%arg0: i32) -> (i32, i32, i32, i32) {
    %c0_i32 = arith.constant 0 : i32
    %c0_i32_0 = arith.constant 0 : i32
    %c0_i32_1 = arith.constant 0 : i32
    %c0_i32_2 = arith.constant 0 : i32
    return %arg0, %c0_i32, %c0_i32_0, %c0_i32_1 : i32, i32, i32, i32
  }
  func.func @transform_1(%arg0: i32) -> (i32, i32) {
    %c0_i32 = arith.constant 0 : i32
    %c0_i32_0 = arith.constant 0 : i32
    %c0_i32_1 = arith.constant 0 : i32
    return %c0_i32, %c0_i32_0 : i32, i32
  }
  func.func @transform_2(%arg0: i32) -> (i32, i32) {
    %c0_i32 = arith.constant 0 : i32
    %c0_i32_0 = arith.constant 0 : i32
    %c0_i32_1 = arith.constant 0 : i32
    return %c0_i32, %c0_i32_0 : i32, i32
  }
  func.func @transform_3(%arg0: i32) -> (i32, i32) {
    %c0_i32 = arith.constant 0 : i32
    %c0_i32_0 = arith.constant 0 : i32
    %c0_i32_1 = arith.constant 0 : i32
    return %c0_i32, %c0_i32_0 : i32, i32
  }
  func.func @transform_4(%arg0: i32) -> (i32, i32) {
    %c0_i32 = arith.constant 0 : i32
    %c0_i32_0 = arith.constant 0 : i32
    %c0_i32_1 = arith.constant 0 : i32
    return %c0_i32, %c0_i32_0 : i32, i32
  }
  func.func @transform_5(%arg0: i32) -> (i32, i32, i32) {
    %c0_i32 = arith.constant 0 : i32
    %c0_i32_0 = arith.constant 0 : i32
    %c0_i32_1 = arith.constant 0 : i32
    return %arg0, %c0_i32, %c0_i32_0 : i32, i32, i32
  }
}

</mosaic_0001>

<bundles_post_ra>
// kernel: tpu_custom_call.1
= control target key start
LH: loop header
LB: loop body
LE: loop exit
PB: predicated region body
PF: predicated region fallthrough
CT: control target
= control target key end

     0   :  { %10 = vsyncpa [#allocation4], 0  ;;  %s3709_s0 = inlined_call_operand.vmem [shape: f32[2,18,18,4], index: 0, kind: input, shape index: {}]   ;;  %s3710_s1 = inlined_call_operand.vmem [shape: bf16[36,128], index: 1, kind: input, shape index: {}]   ;;  %s3711_s2 = inlined_call_operand.vmem [shape: f32[1,128], index: 2, kind: input, shape index: {}]   ;;  %s3712_s3 = inlined_call_operand.vmem [shape: bf16[128,128], index: 3, kind: input, shape index: {}]   ;;  %s3713_s4 = inlined_call_operand.vmem [shape: f32[1,128], index: 4, kind: input, shape index: {}]   ;;  %s3714_s5 = inlined_call_operand.hbm [shape: f32[2,1,128], index: 5, kind: output, shape index: {}]  }
   0x1   :  { %12 = vsyncpa [#allocation4 + $0x1], 0  ;;  %s2428_s18 = smov 0   ;;  %s2430_s19 = smov 0  }
   0x2   :  { %s2432_s20 = smov 0   ;;  %s2434_s21 = smov 0  }
   0x3 LB: > { %s2449_s22 = sadd.s32 4294967295, %s2382_s21   ;;  %s2131_s23 = sadd.s32 4294967294, %s2382_s21   ;;  %s2382_s21 = sphi %s2434_s21, %s3720_s21   ;;  %s2378_s20 = sphi %s2432_s20, %s3719_s20   ;;  %s2374_s19 = sphi %s2430_s19, %s3718_s19   ;;  %s2370_s18 = sphi %s2428_s18, %s3717_s18  }
   0x4   : > { %s2453_s24 = sadd.s32 1, %s2382_s21   ;;  %s135_s25 = sadd.s32 1, %s2378_s20 }
   0x5   : > { %s132_s26 = ssub.s32 %s2382_s21, %s2453_s24  ;;  %p145_p0 = scmp.ne.s32.totalorder %s2378_s20, %s2374_s19 }
   0x6   : > { %p133_p1 = scmp.eq.s32.totalorder %s132_s26, 0  ;;  %p146_p2 = scmp.eq.s32.totalorder %s2449_s22, 1 }
   0x7   : > { %p151_p3 = scmp.ne.s32.totalorder %s2374_s19, %s2370_s18  ;;  %p152_p4 = scmp.eq.s32.totalorder %s2131_s23, 1 }
   0x8   : > { %s2464_s27 = scalar_select %p133_p1, %s2378_s20, %s135_s25  }
   0x9   : > { %p2466_p5 = por %p146_p2, %p145_p0  ;;  %p2470_p6 = por %p152_p4, %p151_p3 }
   0xa   : > { %p2134_p7 = scmp.ge.s32.totalorder %s2382_s21, 1  ;;  %p190_p8 = scmp.lt.s32.totalorder %s2382_s21, 3 }
   0xc   : > { %p191_p9 = pnand %p2134_p7, %p190_p8 }
   0xd   : > { %p217_p10 = scmp.lt.s32.totalorder (!%p191_p9), %s2449_s22, 1  ;;  %vm277_vm0 = vcmask (!%p191_p9), 31744   ;;  %vm358_vm1 = vcmask (!%p191_p9), 1046528   ;;  %s2384_s10 = smov (!%p191_p9), 4   ;;  %vm568_vm2 = vcmask (!%p191_p9), 1045504   ;;  %v2309_v53 = vld [vmem:[%s3710_s1] sm:$0xff] (!%p191_p9)  }
   0xe   : > { %194 = sbr.rel (%p191_p9) target bundleno = 1638 (0x666), region = 40  ;;  %s2385_s11 = smov (!%p191_p9), 8   ;;  %2195 = vmatprep.subr.bf16.mxu0 (!%p191_p9), %v2309_v53  ;;  %v2310_v56 = vld [vmem:[%s3710_s1 + $0x8] sm:$0xff] (!%p191_p9)   ;;  %v2311_v57 = vld [vmem:[%s3710_s1 + $0x10] ss:$0 sps:$4 sm:$0x33] (!%p191_p9)  }
   0xf   : > { %s2386_s12 = smov (!%p191_p9), 12   ;;  %s2387_s13 = smov (!%p191_p9), 16   ;;  %2196 = vmatpush3.bf16.msra.mxu0 (!%p191_p9), %v2309_v53  ;;  %vm1702_vm3 = vcmask (!%p191_p9), 1041408   ;;  %vm535_vm4 = vcmask (!%p191_p9), 64544   ;;  %vm745_vm5 = vcmask (!%p191_p9), 97344   ;;  %vm876_vm6 = vcmask (!%p191_p9), 130144  }
  0x10   : > { %s2388_s14 = smov (!%p191_p9), 20   ;;  %s2389_s15 = smov (!%p191_p9), 24   ;;  %2197 = vmatprep.subr.bf16.mxu0 (!%p191_p9), %v2310_v56  ;;  %v1704_v61 = vsel (!%p191_p9), %vm1702_vm3, %v2311_v57, 0  ;;  %vm1011_vm7 = vcmask (!%p191_p9), 162944   ;;  %vm1145_vm8 = vcmask (!%p191_p9), 195744   ;;  %vm1276_vm9 = vcmask (!%p191_p9), 228544  }
  0x11   : > { %s2390_s16 = smov (!%p191_p9), 28   ;;  %vm1411_vm10 = vcmask (!%p191_p9), 261344   ;;  %vm1545_vm11 = vcmask (!%p191_p9), 294144   ;;  %vm1653_vm12 = vcmask (!%p191_p9), 293888   ;;  %vm2393_vm13 = vmmov (!%p191_p9), 0   ;;  %s2397_s7 = smov (!%p191_p9), [#allocation3]  }
  0x12   : > { %vm2052_vm14 = vcmask (!%p191_p9), 253952  }
  0x13   : > { %2198 = vmatpush3.bf16.msra.mxu0 (!%p191_p9), %v2310_v56 }
  0x14   : > { %2253 = vmatprep.subr.msk.bf16.mxu0 (!%p191_p9), %vm1702_vm3, %v2311_v57 }
  0x15   : > { %s218_s30 = scalar_select %p217_p10, %s2449_s22, 1 }
  0x17   : > { %s2254_s6 = smul.u32 432, %s218_s30  ;;  %s2391_s30 = smov 32   ;;  %2200 = vmatpush3.bf16.msra.mxu0 %v1704_v61 }
  0x19   : > { %s2481_s9 = scalar_lea.vmem %s3709_s0, %s2254_s6 }
  0x1a   : > { %v226_v0 = vld [vmem:[%s2481_s9 + $0x18] sm:$0xff]  ;;  %v227_v1 = vld [vmem:[%s2481_s9 + $0x20] sm:$0xff]  ;;  %v224_v5 = vld [vmem:[%s2481_s9 + $0x8] sm:$0xff] }
  0x1b   : > { %v223_v2 = vld [vmem:[%s2481_s9] sm:$0xff]  ;;  %v364_v3 = vrot.slane %v226_v0, 1  ;;  %v365_v4 = vrot.slane %v227_v1, 1  ;;  %v228_v7 = vld [vmem:[%s2481_s9 + $0x28] sm:$0x3]  ;;  %280 = vst.msk [vmem:[#allocation2 + $0x10] sm:$0xff] %vm277_vm0, %v226_v0 }
  0x1c   : > { %v359_v6 = vrot.slane %v223_v2, 1  ;;  %278 = vst.msk [vmem:[#allocation2] sm:$0xff] %vm277_vm0, %v223_v2  ;;  %281 = vst.msk [vmem:[#allocation2 + $0x18] sm:$0xff] %vm277_vm0, %v227_v1  ;;  %v360_v8 = vrot.slane %v224_v5, 1  ;;  %v367_v9 = vrot.slane %v228_v7, 1  ;;  %v2495_v13 = vld [vmem:[%s2481_s9 + $0x38] sm:$0xff] }
  0x1d   : > { %v225_v10 = vld [vmem:[%s2481_s9 + $0x10] sm:$0x3]  ;;  %279 = vst.msk [vmem:[#allocation2 + $0x8] sm:$0xff] %vm277_vm0, %v224_v5  ;;  %v366_v11 = vsel %vm358_vm1, %v364_v3, %v365_v4  ;;  %v2506_v17 = vld [vmem:[%s2481_s9 + $0x48] sm:$0xff]  ;;  %283 = vst.msk [vmem:[#allocation2 + $0x28] sm:$0xff] %vm277_vm0, %v2495_v13  ;;  %v570_v19 = vrot.slane %v224_v5, 2 }
  0x1e   : > { %v362_v12 = vrot.slane %v225_v10, 1  ;;  %v2498_v14 = vld [vmem:[%s2481_s9 + $0x30] sm:$0xff]  ;;  %443 = vrot.lane.b32.xlu1 %v366_v11, %s2384_s10  ;;  %v361_v16 = vsel %vm358_vm1, %v359_v6, %v360_v8  ;;  %v368_v18 = vsel %vm358_vm1, %v365_v4, %v367_v9  ;;  %v572_v20 = vrot.slane %v225_v10, 2  ;;  %v2517_v21 = vld [vmem:[%s2481_s9 + $0x68] sm:$0xff]  ;;  %v2520_v22 = vld [vmem:[%s2481_s9 + $0x60] sm:$0xff]  ;;  %284 = vst.msk [vmem:[#allocation2 + $0x30] sm:$0xff] %vm277_vm0, %v2506_v17 }
  0x1f   : > { %v2501_v15 = vld [vmem:[%s2481_s9 + $0x50] sm:$0xff]  ;;  %282 = vst.msk [vmem:[#allocation2 + $0x20] sm:$0xff] %vm277_vm0, %v2498_v14  ;;  %439 = vrot.lane.b32.xlu0 %v361_v16, %s2384_s10  ;;  %v569_v24 = vrot.slane %v223_v2, 2  ;;  %v2526_v25 = vld [vmem:[%s2481_s9 + $0x80] sm:$0xff]  ;;  %v2529_v26 = vld [vmem:[%s2481_s9 + $0x78] sm:$0xff]  ;;  %v575_v28 = vrot.slane %v227_v1, 2 }
  0x20   : > { %285 = vst.msk [vmem:[#allocation2 + $0x38] sm:$0xff] %vm277_vm0, %v2501_v15  ;;  %v363_v23 = vsel %vm358_vm1, %v360_v8, %v362_v12  ;;  %286 = vst.msk [vmem:[#allocation2 + $0x40] sm:$0xff] %vm277_vm0, %v2520_v22  ;;  %v573_v27 = vsel %vm568_vm2, %v570_v19, %v572_v20  ;;  %v577_v29 = vrot.slane %v228_v7, 2  ;;  %v574_v31 = vrot.slane %v226_v0, 2  ;;  %v231_v34 = vld [vmem:[%s2481_s9 + $0x40] sm:$0x3] }
  0x21   : > { %287 = vst.msk [vmem:[#allocation2 + $0x48] sm:$0xff] %vm277_vm0, %v2517_v21  ;;  %288 = vst.msk [vmem:[#allocation2 + $0x50] sm:$0xff] %vm277_vm0, %v2529_v26  ;;  %v571_v30 = vsel %vm568_vm2, %v569_v24, %v570_v19  ;;  %v2555_v35 = vld [vmem:[%s2481_s9 + $0x98] sm:$0xff]  ;;  %v2558_v36 = vld [vmem:[%s2481_s9 + $0x90] sm:$0xff]  ;;  %v370_v37 = vrot.slane %v2495_v13, 1  ;;  %v372_v38 = vrot.slane %v231_v34, 1 }
  0x22   : > { %289 = vst.msk [vmem:[#allocation2 + $0x58] sm:$0xff] %vm277_vm0, %v2526_v25  ;;  %445 = vrot.lane.b32.xlu1 %v368_v18, %s2384_s10  ;;  %v578_v32 = vsel %vm568_vm2, %v575_v28, %v577_v29  ;;  %v576_v33 = vsel %vm568_vm2, %v574_v31, %v575_v28  ;;  %291 = vst.msk [vmem:[#allocation2 + $0x68] sm:$0xff] %vm277_vm0, %v2555_v35  ;;  %v369_v39 = vrot.slane %v2498_v14, 1  ;;  %v580_v42 = vrot.slane %v2495_v13, 2  ;;  %v234_v47 = vld [vmem:[%s2481_s9 + $0x58] sm:$0x3] }
  0x23   : > { %441 = vrot.lane.b32.xlu0 %v363_v23, %s2384_s10  ;;  %290 = vst.msk [vmem:[#allocation2 + $0x60] sm:$0xff] %vm277_vm0, %v2558_v36  ;;  %v373_v40 = vsel %vm358_vm1, %v370_v37, %v372_v38  ;;  %v582_v43 = vrot.slane %v231_v34, 2  ;;  %v579_v44 = vrot.slane %v2498_v14, 2  ;;  %v2590_v48 = vld [vmem:[%s2481_s9 + $0xb0] sm:$0xff]  ;;  %v2593_v49 = vld [vmem:[%s2481_s9 + $0xa8] sm:$0xff]  ;;  %v375_v50 = vrot.slane %v2501_v15, 1 }
  0x24   : > { %v371_v41 = vsel %vm358_vm1, %v369_v39, %v370_v37  ;;  %v377_v51 = vrot.slane %v234_v47, 1  ;;  %293 = vst.msk [vmem:[#allocation2 + $0x78] sm:$0xff] %vm277_vm0, %v2590_v48  ;;  %292 = vst.msk [vmem:[#allocation2 + $0x70] sm:$0xff] %vm277_vm0, %v2593_v49  ;;  %v374_v52 = vrot.slane %v2506_v17, 1  ;;  %v585_v58 = vrot.slane %v2501_v15, 2  ;;  %v2645_v2 = vld [vmem:[%s2481_s9 + $0xc0] sm:$0xff] }
  0x25   : > { %v583_v45 = vsel %vm568_vm2, %v580_v42, %v582_v43  ;;  %v581_v46 = vsel %vm568_vm2, %v579_v44, %v580_v42  ;;  %v587_v59 = vrot.slane %v234_v47, 2  ;;  %v584_v60 = vrot.slane %v2506_v17, 2  ;;  %294 = vst.msk [vmem:[#allocation2 + $0x80] sm:$0xff] %vm277_vm0, %v2645_v2  ;;  %v243_v47 = vld [vmem:[%s2481_s9 + $0xa0] sm:$0x3] }
  0x26   : > { %651 = vrot.lane.b32.xlu1 %v573_v27, %s2385_s11  ;;  %v378_v54 = vsel %vm358_vm1, %v375_v50, %v377_v51  ;;  %v376_v55 = vsel %vm358_vm1, %v374_v52, %v375_v50  ;;  %v380_v3 = vrot.slane %v2517_v21, 1  ;;  %v379_v5 = vrot.slane %v2520_v22, 1  ;;  %v2754_v51 = vld [vmem:[%s2481_s9 + $0xf8] sm:$0xff]  ;;  %v2757_v52 = vld [vmem:[%s2481_s9 + $0xf0] sm:$0xff] }
  0x27   : > { %649 = vrot.lane.b32.xlu0 %v571_v30, %s2385_s11  ;;  %v588_v62 = vsel %vm568_vm2, %v585_v58, %v587_v59  ;;  %v586_v63 = vsel %vm568_vm2, %v584_v60, %v585_v58  ;;  %v590_v8 = vrot.slane %v2517_v21, 2  ;;  %v589_v10 = vrot.slane %v2520_v22, 2  ;;  %299 = vst.msk [vmem:[#allocation2 + $0xa8] sm:$0xff] %vm277_vm0, %v2754_v51  ;;  %298 = vst.msk [vmem:[#allocation2 + $0xa0] sm:$0xff] %vm277_vm0, %v2757_v52 }
  0x28   : > { %v381_v7 = vsel %vm358_vm1, %v379_v5, %v380_v3  ;;  %v385_v16 = vrot.slane %v2526_v25, 1  ;;  %v595_v27 = vrot.slane %v2526_v25, 2  ;;  %v594_v30 = vrot.slane %v2529_v26, 2 }
  0x29   : > { %v591_v12 = vsel %vm568_vm2, %v589_v10, %v590_v8  ;;  %v600_v60 = vrot.slane %v2555_v35, 2  ;;  %v602_v61 = vrot.slane %v243_v47, 2  ;;  %v246_v10 = vld [vmem:[%s2481_s9 + $0xb8] sm:$0x3] }
  0x2a   : > { %655 = vrot.lane.b32.xlu1 %v578_v32, %s2385_s11  ;;  %v2718_v34 = vsel %vm568_vm2, %v594_v30, %v595_v27  ;;  %v605_v30 = vrot.slane %v2590_v48, 2 }
  0x2b   : > { %653 = vrot.lane.b32.xlu0 %v576_v33, %s2385_s11 }
  0x2e   : > { %782 = vrot.lane.b32.xlu1 %v227_v1, %s2386_s12  ;;  %v2642_v1 = vld [vmem:[%s2481_s9 + $0xc8] sm:$0xff] }
  0x2f   : > { %780 = vrot.lane.b32.xlu0 %v226_v0, %s2386_s12  ;;  %v237_v0 = vld [vmem:[%s2481_s9 + $0x70] sm:$0x3]  ;;  %295 = vst.msk [vmem:[#allocation2 + $0x88] sm:$0xff] %vm277_vm0, %v2642_v1 }
  0x30   : > { %v382_v4 = vrot.slane %v237_v0, 1  ;;  %v592_v9 = vrot.slane %v237_v0, 2 }
  0x32   : > { %786 = vrot.lane.b32.xlu1 %v2495_v13, %s2386_s12  ;;  %v383_v6 = vsel %vm358_vm1, %v380_v3, %v382_v4  ;;  %v2794_v3 = vsel %vm568_vm2, %v600_v60, %v602_v61 }
  0x33   : > { %784 = vrot.lane.b32.xlu0 %v2498_v14, %s2386_s12 }
  0x36   : > { %917 = vrot.lane.b32.xlu1 %v368_v18, %s2387_s13  ;;  %v384_v18 = vrot.slane %v2529_v26, 1 }
  0x37   : > { %915 = vrot.lane.b32.xlu0 %v366_v11, %s2387_s13  ;;  %v593_v11 = vsel %vm568_vm2, %v590_v8, %v592_v9 }
  0x3a   : > { %921 = vrot.lane.b32.xlu1 %v373_v40, %s2387_s13 }
  0x3b   : > { %919 = vrot.lane.b32.xlu0 %v371_v41, %s2387_s13 }
  0x3e   : > { %1051 = vrot.lane.b32.xlu1 %v578_v32, %s2388_s14 }
  0x3f   : > { %1049 = vrot.lane.b32.xlu0 %v576_v33, %s2388_s14 }
  0x42   : > { %1055 = vrot.lane.b32.xlu1 %v583_v45, %s2388_s14 }
  0x43   : > { %1053 = vrot.lane.b32.xlu0 %v581_v46, %s2388_s14 }
  0x46   : > { %1182 = vrot.lane.b32.xlu1 %v2495_v13, %s2389_s15  ;;  %v240_v13 = vld [vmem:[%s2481_s9 + $0x88] sm:$0x3] }
  0x47   : > { %1180 = vrot.lane.b32.xlu0 %v2498_v14, %s2389_s15  ;;  %v2677_v14 = vld [vmem:[%s2481_s9 + $0xe0] sm:$0xff]  ;;  %v597_v28 = vrot.slane %v240_v13, 2 }
  0x48   : > { %297 = vst.msk [vmem:[#allocation2 + $0x98] sm:$0xff] %vm277_vm0, %v2677_v14 }
  0x49   : > { %v2715_v32 = vsel %vm568_vm2, %v595_v27, %v597_v28 }
  0x4a   : > { %1186 = vrot.lane.b32.xlu1 %v2501_v15, %s2389_s15 }
  0x4b   : > { %1184 = vrot.lane.b32.xlu0 %v2506_v17, %s2389_s15 }
  0x4e   : > { %1317 = vrot.lane.b32.xlu1 %v373_v40, %s2390_s16 }
  0x4f   : > { %1315 = vrot.lane.b32.xlu0 %v371_v41, %s2390_s16 }
  0x52   : > { %1321 = vrot.lane.b32.xlu1 %v378_v54, %s2390_s16 }
  0x53   : > { %1319 = vrot.lane.b32.xlu0 %v376_v55, %s2390_s16 }
  0x56   : > { %1451 = vrot.lane.b32.xlu1 %v583_v45, %s2391_s30 }
  0x57   : > { %1449 = vrot.lane.b32.xlu0 %v581_v46, %s2391_s30 }
  0x5a   : > { %449 = vrot.lane.b32.xlu1 %v373_v40, %s2384_s10 }
  0x5b   : > { %447 = vrot.lane.b32.xlu0 %v371_v41, %s2384_s10 }
  0x5e   : > { %1455 = vrot.lane.b32.xlu1 %v588_v62, %s2391_s30 }
  0x5f   : > { %1453 = vrot.lane.b32.xlu0 %v586_v63, %s2391_s30 }
  0x62   : > { %453 = vrot.lane.b32.xlu1 %v378_v54, %s2384_s10 }
  0x63   : > { %451 = vrot.lane.b32.xlu0 %v376_v55, %s2384_s10 }
  0x66   : > { %659 = vrot.lane.b32.xlu1 %v583_v45, %s2385_s11 }
  0x67   : > { %657 = vrot.lane.b32.xlu0 %v581_v46, %s2385_s11 }
  0x6a   : > { %663 = vrot.lane.b32.xlu1 %v588_v62, %s2385_s11 }
  0x6b   : > { %661 = vrot.lane.b32.xlu0 %v586_v63, %s2385_s11 }
  0x6e   : > { %790 = vrot.lane.b32.xlu1 %v2501_v15, %s2386_s12  ;;  %v2680_v15 = vld [vmem:[%s2481_s9 + $0xd8] sm:$0xff] }
  0x6f   : > { %788 = vrot.lane.b32.xlu0 %v2506_v17, %s2386_s12  ;;  %v387_v17 = vrot.slane %v240_v13, 1  ;;  %296 = vst.msk [vmem:[#allocation2 + $0x90] sm:$0xff] %vm277_vm0, %v2680_v15  ;;  %v2820_v13 = vld [vmem:[%s2481_s9 + $0x108] sm:$0xff] }
  0x70   : > { %300 = vst.msk [vmem:[#allocation2 + $0xb0] sm:$0xff] %vm277_vm0, %v2820_v13 }
  0x71   : > { %v2693_v19 = vsel %vm358_vm1, %v385_v16, %v387_v17  ;;  %v394_v17 = vrot.slane %v2593_v49, 1 }
  0x72   : > { %794 = vrot.lane.b32.xlu1 %v2517_v21, %s2386_s12 }
  0x73   : > { %792 = vrot.lane.b32.xlu0 %v2520_v22, %s2386_s12 }
  0x76   : > { %925 = vrot.lane.b32.xlu1 %v378_v54, %s2387_s13  ;;  %v389_v54 = vrot.slane %v2558_v36, 1 }
  0x77   : > { %923 = vrot.lane.b32.xlu0 %v376_v55, %s2387_s13 }
  0x7a   : > { %929 = vrot.lane.b32.xlu1 %v383_v6, %s2387_s13 }
  0x7b   : > { %927 = vrot.lane.b32.xlu0 %v381_v7, %s2387_s13 }
  0x7e   : > { %1059 = vrot.lane.b32.xlu1 %v588_v62, %s2388_s14 }
  0x7f   : > { %1057 = vrot.lane.b32.xlu0 %v586_v63, %s2388_s14  ;;  %v599_v63 = vrot.slane %v2558_v36, 2 }
  0x81   : > { %v2797_v5 = vsel %vm568_vm2, %v599_v63, %v600_v60  ;;  %v399_v60 = vrot.slane %v2645_v2, 1 }
  0x82   : > { %1063 = vrot.lane.b32.xlu1 %v593_v11, %s2388_s14 }
  0x83   : > { %1061 = vrot.lane.b32.xlu0 %v591_v12, %s2388_s14 }
  0x86   : > { %1190 = vrot.lane.b32.xlu1 %v2517_v21, %s2389_s15  ;;  %v2696_v21 = vsel %vm358_vm1, %v384_v18, %v385_v16 }
  0x87   : > { %1188 = vrot.lane.b32.xlu0 %v2520_v22, %s2389_s15 }
  0x8a   : > { %1194 = vrot.lane.b32.xlu1 %v2526_v25, %s2389_s15 }
  0x8b   : > { %1192 = vrot.lane.b32.xlu0 %v2529_v26, %s2389_s15 }
  0x8e   : > { %1325 = vrot.lane.b32.xlu1 %v383_v6, %s2390_s16 }
  0x8f   : > { %1323 = vrot.lane.b32.xlu0 %v381_v7, %s2390_s16 }
  0x90   : > { %v444_v20 = vpop.permute.xlu1 %443 }
  0x91   : > { %538 = vst.msk [vmem:[#allocation2 + $0x10] sm:$0xff] %vm535_vm4, %v444_v20  ;;  %v440_v22 = vpop.permute.xlu0 %439 }
  0x92   : > { %536 = vst.msk [vmem:[#allocation2] sm:$0xff] %vm535_vm4, %v440_v22  ;;  %1329 = vrot.lane.b32.xlu1 %v2693_v19, %s2390_s16 }
  0x93   : > { %1327 = vrot.lane.b32.xlu0 %v2696_v21, %s2390_s16 }
  0x94   : > { %v446_v23 = vpop.permute.xlu1 %445 }
  0x95   : > { %539 = vst.msk [vmem:[#allocation2 + $0x18] sm:$0xff] %vm535_vm4, %v446_v23  ;;  %v442_v24 = vpop.permute.xlu0 %441 }
  0x96   : > { %537 = vst.msk [vmem:[#allocation2 + $0x8] sm:$0xff] %vm535_vm4, %v442_v24  ;;  %1459 = vrot.lane.b32.xlu1 %v593_v11, %s2391_s30 }
  0x97   : > { %1457 = vrot.lane.b32.xlu0 %v591_v12, %s2391_s30 }
  0x98   : > { %v652_v29 = vpop.permute.xlu1 %651 }
  0x99   : > { %747 = vst.msk [vmem:[#allocation2 + $0x8] sm:$0xff] %vm745_vm5, %v652_v29  ;;  %v650_v31 = vpop.permute.xlu0 %649 }
  0x9a   : > { %746 = vst.msk [vmem:[#allocation2] sm:$0xff] %vm745_vm5, %v650_v31  ;;  %457 = vrot.lane.b32.xlu1 %v383_v6, %s2384_s10  ;;  %v607_v31 = vrot.slane %v246_v10, 2 }
  0x9b   : > { %455 = vrot.lane.b32.xlu0 %v381_v7, %s2384_s10 }
  0x9c   : > { %v656_v33 = vpop.permute.xlu1 %655 }
  0x9d   : > { %749 = vst.msk [vmem:[#allocation2 + $0x18] sm:$0xff] %vm745_vm5, %v656_v33  ;;  %v654_v37 = vpop.permute.xlu0 %653 }
  0x9e   : > { %748 = vst.msk [vmem:[#allocation2 + $0x10] sm:$0xff] %vm745_vm5, %v654_v37  ;;  %1463 = vrot.lane.b32.xlu1 %v2715_v32, %s2391_s30 }
  0x9f   : > { %1461 = vrot.lane.b32.xlu0 %v2718_v34, %s2391_s30 }
  0xa0   : > { %v783_v38 = vpop.permute.xlu1 %782 }
  0xa1   : > { %878 = vst.msk [vmem:[#allocation2 + $0x8] sm:$0xff] %vm876_vm6, %v783_v38  ;;  %v781_v39 = vpop.permute.xlu0 %780 }
  0xa2   : > { %877 = vst.msk [vmem:[#allocation2] sm:$0xff] %vm876_vm6, %v781_v39  ;;  %461 = vrot.lane.b32.xlu1 %v2693_v19, %s2384_s10 }
  0xa3   : > { %459 = vrot.lane.b32.xlu0 %v2696_v21, %s2384_s10 }
  0xa4   : > { %v787_v40 = vpop.permute.xlu1 %786 }
  0xa5   : > { %880 = vst.msk [vmem:[#allocation2 + $0x18] sm:$0xff] %vm876_vm6, %v787_v40  ;;  %v785_v41 = vpop.permute.xlu0 %784  ;;  %v2864_v40 = vsel %vm568_vm2, %v605_v30, %v607_v31 }
  0xa6   : > { %879 = vst.msk [vmem:[#allocation2 + $0x10] sm:$0xff] %vm876_vm6, %v785_v41  ;;  %667 = vrot.lane.b32.xlu1 %v593_v11, %s2385_s11 }
  0xa7   : > { %665 = vrot.lane.b32.xlu0 %v591_v12, %s2385_s11  ;;  %v2817_v12 = vld [vmem:[%s2481_s9 + $0x110] sm:$0xff] }
  0xa8   : > { %v918_v42 = vpop.permute.xlu1 %917  ;;  %301 = vst.msk [vmem:[#allocation2 + $0xb8] sm:$0xff] %vm277_vm0, %v2817_v12 }
  0xa9   : > { %1013 = vst.msk [vmem:[#allocation2 + $0x8] sm:$0xff] %vm1011_vm7, %v918_v42  ;;  %v916_v43 = vpop.permute.xlu0 %915 }
  0xaa   : > { %1012 = vst.msk [vmem:[#allocation2] sm:$0xff] %vm1011_vm7, %v916_v43  ;;  %671 = vrot.lane.b32.xlu1 %v2715_v32, %s2385_s11 }
  0xab   : > { %669 = vrot.lane.b32.xlu0 %v2718_v34, %s2385_s11 }
  0xac   : > { %v922_v44 = vpop.permute.xlu1 %921 }
  0xad   : > { %1015 = vst.msk [vmem:[#allocation2 + $0x18] sm:$0xff] %vm1011_vm7, %v922_v44  ;;  %v920_v45 = vpop.permute.xlu0 %919 }
  0xae   : > { %1014 = vst.msk [vmem:[#allocation2 + $0x10] sm:$0xff] %vm1011_vm7, %v920_v45  ;;  %798 = vrot.lane.b32.xlu1 %v2526_v25, %s2386_s12  ;;  %v390_v25 = vrot.slane %v2555_v35, 1 }
  0xaf   : > { %796 = vrot.lane.b32.xlu0 %v2529_v26, %s2386_s12  ;;  %v392_v26 = vrot.slane %v243_v47, 1 }
  0xb0   : > { %v1052_v46 = vpop.permute.xlu1 %1051  ;;  %v2777_v58 = vsel %vm358_vm1, %v389_v54, %v390_v25 }
  0xb1   : > { %1147 = vst.msk [vmem:[#allocation2 + $0x8] sm:$0xff] %vm1145_vm8, %v1052_v46  ;;  %v1050_v50 = vpop.permute.xlu0 %1049  ;;  %v2774_v56 = vsel %vm358_vm1, %v390_v25, %v392_v26 }
  0xb2   : > { %1146 = vst.msk [vmem:[#allocation2] sm:$0xff] %vm1145_vm8, %v1050_v50  ;;  %802 = vrot.lane.b32.xlu1 %v2555_v35, %s2386_s12 }
  0xb3   : > { %800 = vrot.lane.b32.xlu0 %v2558_v36, %s2386_s12 }
  0xb4   : > { %v1056_v53 = vpop.permute.xlu1 %1055 }
  0xb5   : > { %1149 = vst.msk [vmem:[#allocation2 + $0x18] sm:$0xff] %vm1145_vm8, %v1056_v53  ;;  %v1054_v55 = vpop.permute.xlu0 %1053 }
  0xb6   : > { %1148 = vst.msk [vmem:[#allocation2 + $0x10] sm:$0xff] %vm1145_vm8, %v1054_v55  ;;  %933 = vrot.lane.b32.xlu1 %v2693_v19, %s2387_s13  ;;  %v249_v55 = vld [vmem:[%s2481_s9 + $0xd0] sm:$0x3] }
  0xb7   : > { %931 = vrot.lane.b32.xlu0 %v2696_v21, %s2387_s13 }
  0xb8   : > { %v1183_v57 = vpop.permute.xlu1 %1182 }
  0xb9   : > { %1278 = vst.msk [vmem:[#allocation2 + $0x8] sm:$0xff] %vm1276_vm9, %v1183_v57  ;;  %v1181_v59 = vpop.permute.xlu0 %1180  ;;  %v2906_v57 = vld [vmem:[%s2481_s9 + $0x128] sm:$0xff] }
  0xba   : > { %1277 = vst.msk [vmem:[#allocation2] sm:$0xff] %vm1276_vm9, %v1181_v59  ;;  %937 = vrot.lane.b32.xlu1 %v2774_v56, %s2387_s13 }
  0xbb   : > { %935 = vrot.lane.b32.xlu0 %v2777_v58, %s2387_s13  ;;  %303 = vst.msk [vmem:[#allocation2 + $0xc8] sm:$0xff] %vm277_vm0, %v2906_v57 }
  0xbc   : > { %v1187_v62 = vpop.permute.xlu1 %1186 }
  0xbd   : > { %1280 = vst.msk [vmem:[#allocation2 + $0x18] sm:$0xff] %vm1276_vm9, %v1187_v62  ;;  %v1185_v0 = vpop.permute.xlu0 %1184 }
  0xbe   : > { %1279 = vst.msk [vmem:[#allocation2 + $0x10] sm:$0xff] %vm1276_vm9, %v1185_v0  ;;  %1067 = vrot.lane.b32.xlu1 %v2715_v32, %s2388_s14 }
  0xbf   : > { %1065 = vrot.lane.b32.xlu0 %v2718_v34, %s2388_s14  ;;  %v604_v34 = vrot.slane %v2593_v49, 2 }
  0xc0   : > { %v1318_v4 = vpop.permute.xlu1 %1317 }
  0xc1   : > { %1413 = vst.msk [vmem:[#allocation2 + $0x8] sm:$0xff] %vm1411_vm10, %v1318_v4  ;;  %v1316_v6 = vpop.permute.xlu0 %1315  ;;  %v2868_v42 = vsel %vm568_vm2, %v604_v34, %v605_v30  ;;  %v610_v4 = vrot.slane %v2642_v1, 2 }
  0xc2   : > { %1412 = vst.msk [vmem:[#allocation2] sm:$0xff] %vm1411_vm10, %v1316_v6  ;;  %1071 = vrot.lane.b32.xlu1 %v2794_v3, %s2388_s14 }
  0xc3   : > { %1069 = vrot.lane.b32.xlu0 %v2797_v5, %s2388_s14 }
  0xc4   : > { %v1322_v7 = vpop.permute.xlu1 %1321 }
  0xc5   : > { %1415 = vst.msk [vmem:[#allocation2 + $0x18] sm:$0xff] %vm1411_vm10, %v1322_v7  ;;  %v1320_v8 = vpop.permute.xlu0 %1319  ;;  %v609_v7 = vrot.slane %v2645_v2, 2 }
  0xc6   : > { %1414 = vst.msk [vmem:[#allocation2 + $0x10] sm:$0xff] %vm1411_vm10, %v1320_v8  ;;  %1198 = vrot.lane.b32.xlu1 %v2555_v35, %s2389_s15  ;;  %v395_v35 = vrot.slane %v2590_v48, 1 }
  0xc7   : > { %1196 = vrot.lane.b32.xlu0 %v2558_v36, %s2389_s15  ;;  %v397_v36 = vrot.slane %v246_v10, 1 }
  0xc8   : > { %v1452_v9 = vpop.permute.xlu1 %1451  ;;  %v2840_v21 = vsel %vm358_vm1, %v394_v17, %v395_v35 }
  0xc9   : > { %1547 = vst.msk [vmem:[#allocation2 + $0x8] sm:$0xff] %vm1545_vm11, %v1452_v9  ;;  %v1450_v11 = vpop.permute.xlu0 %1449  ;;  %v2837_v19 = vsel %vm358_vm1, %v395_v35, %v397_v36 }
  0xca   : > { %1546 = vst.msk [vmem:[#allocation2] sm:$0xff] %vm1545_vm11, %v1450_v11  ;;  %1202 = vrot.lane.b32.xlu1 %v2590_v48, %s2389_s15  ;;  %v2949_v11 = vsel %vm568_vm2, %v609_v7, %v610_v4 }
  0xcb   : > { %1200 = vrot.lane.b32.xlu0 %v2593_v49, %s2389_s15 }
  0xcc   : > { %v450_v16 = vpop.permute.xlu1 %449 }
  0xcd   : > { %541 = vst.msk [vmem:[#allocation2 + $0x28] sm:$0xff] %vm535_vm4, %v450_v16  ;;  %v448_v18 = vpop.permute.xlu0 %447 }
  0xce   : > { %540 = vst.msk [vmem:[#allocation2 + $0x20] sm:$0xff] %vm535_vm4, %v448_v18  ;;  %1333 = vrot.lane.b32.xlu1 %v2774_v56, %s2390_s16  ;;  %v252_v18 = vld [vmem:[%s2481_s9 + $0xe8] sm:$0x3] }
  0xcf   : > { %1331 = vrot.lane.b32.xlu0 %v2777_v58, %s2390_s16 }
  0xd0   : > { %v1456_v20 = vpop.permute.xlu1 %1455  ;;  %v1579_v22 = vld [vmem:[#allocation2 + $0x8] sm:$0xff] }
  0xd1   : > { %1549 = vst.msk [vmem:[#allocation2 + $0x18] sm:$0xff] %vm1545_vm11, %v1456_v20  ;;  %v1454_v23 = vpop.permute.xlu0 %1453  ;;  %v1578_v24 = vld [vmem:[#allocation2] sm:$0xff] }
  0xd2   : > { %1548 = vst.msk [vmem:[#allocation2 + $0x10] sm:$0xff] %vm1545_vm11, %v1454_v23  ;;  %1337 = vrot.lane.b32.xlu1 %v2837_v19, %s2390_s16  ;;  %v1610_v27 = vpack.c.bf16 %v1579_v22, %v1578_v24  ;;  %v2969_v20 = vld [vmem:[%s2481_s9 + $0x140] sm:$0xff]  ;;  %v404_v23 = vrot.slane %v2680_v15, 1 }
  0xd3   : > { %1335 = vrot.lane.b32.xlu0 %v2840_v21, %s2390_s16  ;;  %305 = vst.msk [vmem:[#allocation2 + $0xd8] sm:$0xff] %vm277_vm0, %v2969_v20 }
  0xd4   : > { %2201 = vmatprep.mubr.msk.bf16.mxu0 %vm1653_vm12, %v1610_v27  ;;  %v454_v28 = vpop.permute.xlu1 %453 }
  0xd5   : > { %543 = vst.msk [vmem:[#allocation2 + $0x38] sm:$0xff] %vm535_vm4, %v454_v28  ;;  %v452_v29 = vpop.permute.xlu0 %451 }
  0xd6   : > { %542 = vst.msk [vmem:[#allocation2 + $0x30] sm:$0xff] %vm535_vm4, %v452_v29  ;;  %1467 = vrot.lane.b32.xlu1 %v2794_v3, %s2391_s30 }
  0xd7   : > { %1465 = vrot.lane.b32.xlu0 %v2797_v5, %s2391_s30 }
  0xd8   : > { %v660_v32 = vpop.permute.xlu1 %659  ;;  %v1581_v33 = vld [vmem:[#allocation2 + $0x18] sm:$0xff] }
  0xd9   : > { %751 = vst.msk [vmem:[#allocation2 + $0x28] sm:$0xff] %vm745_vm5, %v660_v32  ;;  %v658_v37 = vpop.permute.xlu0 %657  ;;  %v1580_v38 = vld [vmem:[#allocation2 + $0x10] sm:$0xff] }
  0xda   : > { %750 = vst.msk [vmem:[#allocation2 + $0x20] sm:$0xff] %vm745_vm5, %v658_v37  ;;  %465 = vrot.lane.b32.xlu1 %v2774_v56, %s2384_s10  ;;  %v1611_v39 = vpack.c.bf16 %v1581_v33, %v1580_v38  ;;  %v615_v38 = vrot.slane %v2677_v14, 2 }
  0xdb   : > { %463 = vrot.lane.b32.xlu0 %v2777_v58, %s2384_s10  ;;  %v2909_v58 = vld [vmem:[%s2481_s9 + $0x120] sm:$0xff] }
  0xdc   : > { %2202 = vmatmul.mubr.msk.bf16.vlgmr.msra.gmra.mrb[0].mxu0 %vm1653_vm12, %v1611_v39  ;;  %v664_v41 = vpop.permute.xlu1 %663  ;;  %302 = vst.msk [vmem:[#allocation2 + $0xc0] sm:$0xff] %vm277_vm0, %v2909_v58  ;;  %v617_v39 = vrot.slane %v252_v18, 2 }
  0xdd   : > { %753 = vst.msk [vmem:[#allocation2 + $0x38] sm:$0xff] %vm745_vm5, %v664_v41  ;;  %v662_v43 = vpop.permute.xlu0 %661 }
  0xde   : > { %752 = vst.msk [vmem:[#allocation2 + $0x30] sm:$0xff] %vm745_vm5, %v662_v43  ;;  %1471 = vrot.lane.b32.xlu1 %v2864_v40, %s2391_s30 }
  0xdf   : > { %1469 = vrot.lane.b32.xlu0 %v2868_v42, %s2391_s30 }
  0xe0   : > { %v791_v44 = vpop.permute.xlu1 %790 }
  0xe1   : > { %882 = vst.msk [vmem:[#allocation2 + $0x28] sm:$0xff] %vm876_vm6, %v791_v44  ;;  %v789_v45 = vpop.permute.xlu0 %788 }
  0xe2   : > { %881 = vst.msk [vmem:[#allocation2 + $0x20] sm:$0xff] %vm876_vm6, %v789_v45  ;;  %469 = vrot.lane.b32.xlu1 %v2837_v19, %s2384_s10 }
  0xe3   : > { %467 = vrot.lane.b32.xlu0 %v2840_v21, %s2384_s10 }
  0xe4   : > { %v795_v46 = vpop.permute.xlu1 %794 }
  0xe5   : > { %884 = vst.msk [vmem:[#allocation2 + $0x38] sm:$0xff] %vm876_vm6, %v795_v46  ;;  %v793_v47 = vpop.permute.xlu0 %792  ;;  %v3016_v46 = vsel %vm568_vm2, %v615_v38, %v617_v39 }
  0xe6   : > { %883 = vst.msk [vmem:[#allocation2 + $0x30] sm:$0xff] %vm876_vm6, %v793_v47  ;;  %675 = vrot.lane.b32.xlu1 %v2794_v3, %s2385_s11 }
  0xe7   : > { %673 = vrot.lane.b32.xlu0 %v2797_v5, %s2385_s11  ;;  %v612_v5 = vrot.slane %v249_v55, 2 }
  0xe8   : > { %v926_v50 = vpop.permute.xlu1 %925 }
  0xe9   : > { %1017 = vst.msk [vmem:[#allocation2 + $0x28] sm:$0xff] %vm1011_vm7, %v926_v50  ;;  %v924_v25 = vpop.permute.xlu0 %923  ;;  %v2946_v9 = vsel %vm568_vm2, %v610_v4, %v612_v5  ;;  %v409_v4 = vrot.slane %v2757_v52, 1 }
  0xea   : > { %1016 = vst.msk [vmem:[#allocation2 + $0x20] sm:$0xff] %vm1011_vm7, %v924_v25  ;;  %679 = vrot.lane.b32.xlu1 %v2864_v40, %s2385_s11 }
  0xeb   : > { %677 = vrot.lane.b32.xlu0 %v2868_v42, %s2385_s11 }
  0xec   : > { %v930_v26 = vpop.permute.xlu1 %929 }
  0xed   : > { %1019 = vst.msk [vmem:[#allocation2 + $0x38] sm:$0xff] %vm1011_vm7, %v930_v26  ;;  %v928_v53 = vpop.permute.xlu0 %927 }
  0xee   : > { %1018 = vst.msk [vmem:[#allocation2 + $0x30] sm:$0xff] %vm1011_vm7, %v928_v53  ;;  %806 = vrot.lane.b32.xlu1 %v2590_v48, %s2386_s12  ;;  %v400_v48 = vrot.slane %v2642_v1, 1 }
  0xef   : > { %804 = vrot.lane.b32.xlu0 %v2593_v49, %s2386_s12  ;;  %v402_v49 = vrot.slane %v249_v55, 1 }
  0xf0   : > { %v1060_v54 = vpop.permute.xlu1 %1059  ;;  %v2929_v0 = vsel %vm358_vm1, %v399_v60, %v400_v48 }
  0xf1   : > { %1151 = vst.msk [vmem:[#allocation2 + $0x28] sm:$0xff] %vm1145_vm8, %v1060_v54  ;;  %v1058_v56 = vpop.permute.xlu0 %1057  ;;  %v2926_v62 = vsel %vm358_vm1, %v400_v48, %v402_v49 }
  0xf2   : > { %1150 = vst.msk [vmem:[#allocation2 + $0x20] sm:$0xff] %vm1145_vm8, %v1058_v56  ;;  %810 = vrot.lane.b32.xlu1 %v2642_v1, %s2386_s12 }
  0xf3   : > { %808 = vrot.lane.b32.xlu0 %v2645_v2, %s2386_s12 }
  0xf4   : > { %v1064_v59 = vpop.permute.xlu1 %1063 }
  0xf5   : > { %1153 = vst.msk [vmem:[#allocation2 + $0x38] sm:$0xff] %vm1145_vm8, %v1064_v59  ;;  %v1062_v61 = vpop.permute.xlu0 %1061 }
  0xf6   : > { %1152 = vst.msk [vmem:[#allocation2 + $0x30] sm:$0xff] %vm1145_vm8, %v1062_v61  ;;  %941 = vrot.lane.b32.xlu1 %v2837_v19, %s2387_s13  ;;  %v255_v61 = vld [vmem:[%s2481_s9 + $0x100] sm:$0x3] }
  0xf7   : > { %939 = vrot.lane.b32.xlu0 %v2840_v21, %s2387_s13  ;;  %v2972_v21 = vld [vmem:[%s2481_s9 + $0x138] sm:$0xff] }
  0xf8   : > { %v1191_v63 = vpop.permute.xlu1 %1190  ;;  %304 = vst.msk [vmem:[#allocation2 + $0xd0] sm:$0xff] %vm277_vm0, %v2972_v21 }
  0xf9   : > { %1282 = vst.msk [vmem:[#allocation2 + $0x28] sm:$0xff] %vm1276_vm9, %v1191_v63  ;;  %v1189_v3 = vpop.permute.xlu0 %1188  ;;  %v3058_v63 = vld [vmem:[%s2481_s9 + $0x158] sm:$0xff] }
  0xfa   : > { %1281 = vst.msk [vmem:[#allocation2 + $0x20] sm:$0xff] %vm1276_vm9, %v1189_v3  ;;  %945 = vrot.lane.b32.xlu1 %v2926_v62, %s2387_s13 }
  0xfb   : > { %943 = vrot.lane.b32.xlu0 %v2929_v0, %s2387_s13  ;;  %307 = vst.msk [vmem:[#allocation2 + $0xe8] sm:$0xff] %vm277_vm0, %v3058_v63 }
  0xfc   : > { %v1195_v6 = vpop.permute.xlu1 %1194 }
  0xfd   : > { %1284 = vst.msk [vmem:[#allocation2 + $0x38] sm:$0xff] %vm1276_vm9, %v1195_v6  ;;  %v1193_v8 = vpop.permute.xlu0 %1192 }
  0xfe   : > { %1283 = vst.msk [vmem:[#allocation2 + $0x30] sm:$0xff] %vm1276_vm9, %v1193_v8  ;;  %1075 = vrot.lane.b32.xlu1 %v2864_v40, %s2388_s14 }
  0xff   : > { %1073 = vrot.lane.b32.xlu0 %v2868_v42, %s2388_s14  ;;  %v614_v42 = vrot.slane %v2680_v15, 2 }
 0x100   : > { %v1326_v10 = vpop.permute.xlu1 %1325 }
 0x101   : > { %1417 = vst.msk [vmem:[#allocation2 + $0x28] sm:$0xff] %vm1411_vm10, %v1326_v10  ;;  %v1324_v35 = vpop.permute.xlu0 %1323  ;;  %v3020_v50 = vsel %vm568_vm2, %v614_v42, %v615_v38  ;;  %v620_v10 = vrot.slane %v2754_v51, 2 }
 0x102   : > { %1416 = vst.msk [vmem:[#allocation2 + $0x20] sm:$0xff] %vm1411_vm10, %v1324_v35  ;;  %1079 = vrot.lane.b32.xlu1 %v2946_v9, %s2388_s14 }
 0x103   : > { %1077 = vrot.lane.b32.xlu0 %v2949_v11, %s2388_s14 }
 0x104   : > { %v1330_v36 = vpop.permute.xlu1 %1329 }
 0x105   : > { %1419 = vst.msk [vmem:[#allocation2 + $0x38] sm:$0xff] %vm1411_vm10, %v1330_v36  ;;  %v1328_v16 = vpop.permute.xlu0 %1327  ;;  %v619_v36 = vrot.slane %v2757_v52, 2 }
 0x106   : > { %1418 = vst.msk [vmem:[#allocation2 + $0x30] sm:$0xff] %vm1411_vm10, %v1328_v16  ;;  %1206 = vrot.lane.b32.xlu1 %v2642_v1, %s2389_s15  ;;  %v405_v1 = vrot.slane %v2677_v14, 1 }
 0x107   : > { %1204 = vrot.lane.b32.xlu0 %v2645_v2, %s2389_s15  ;;  %v407_v2 = vrot.slane %v252_v18, 1 }
 0x108   : > { %v1460_v17 = vpop.permute.xlu1 %1459  ;;  %v2992_v29 = vsel %vm358_vm1, %v404_v23, %v405_v1 }
 0x109   : > { %1551 = vst.msk [vmem:[#allocation2 + $0x28] sm:$0xff] %vm1545_vm11, %v1460_v17  ;;  %v1458_v19 = vpop.permute.xlu0 %1457  ;;  %v2989_v27 = vsel %vm358_vm1, %v405_v1, %v407_v2 }
 0x10a   : > { %1550 = vst.msk [vmem:[#allocation2 + $0x20] sm:$0xff] %vm1545_vm11, %v1458_v19  ;;  %1210 = vrot.lane.b32.xlu1 %v2677_v14, %s2389_s15  ;;  %v3101_v19 = vsel %vm568_vm2, %v619_v36, %v620_v10 }
 0x10b   : > { %1208 = vrot.lane.b32.xlu0 %v2680_v15, %s2389_s15 }
 0x10c   : > { %v458_v22 = vpop.permute.xlu1 %457 }
 0x10d   : > { %545 = vst.msk [vmem:[#allocation2 + $0x48] sm:$0xff] %vm535_vm4, %v458_v22  ;;  %v456_v24 = vpop.permute.xlu0 %455 }
 0x10e   : > { %544 = vst.msk [vmem:[#allocation2 + $0x40] sm:$0xff] %vm535_vm4, %v456_v24  ;;  %1341 = vrot.lane.b32.xlu1 %v2926_v62, %s2390_s16  ;;  %v258_v24 = vld [vmem:[%s2481_s9 + $0x118] sm:$0x3] }
 0x10f   : > { %1339 = vrot.lane.b32.xlu0 %v2929_v0, %s2390_s16 }
 0x110   : > { %v1464_v28 = vpop.permute.xlu1 %1463  ;;  %v1583_v30 = vld [vmem:[#allocation2 + $0x28] sm:$0xff] }
 0x111   : > { %1553 = vst.msk [vmem:[#allocation2 + $0x38] sm:$0xff] %vm1545_vm11, %v1464_v28  ;;  %v1462_v31 = vpop.permute.xlu0 %1461  ;;  %v1582_v32 = vld [vmem:[#allocation2 + $0x20] sm:$0xff]  ;;  %v3121_v28 = vld [vmem:[%s2481_s9 + $0x170] sm:$0xff] }
 0x112   : > { %1552 = vst.msk [vmem:[#allocation2 + $0x30] sm:$0xff] %vm1545_vm11, %v1462_v31  ;;  %1345 = vrot.lane.b32.xlu1 %v2989_v27, %s2390_s16  ;;  %v1612_v33 = vpack.c.bf16 %v1583_v30, %v1582_v32  ;;  %v414_v31 = vrot.slane %v2820_v13, 1 }
 0x113   : > { %1343 = vrot.lane.b32.xlu0 %v2992_v29, %s2390_s16  ;;  %309 = vst.msk [vmem:[#allocation2 + $0xf8] sm:$0xff] %vm277_vm0, %v3121_v28 }
 0x114   : > { %2205 = vmatprep.mubr.msk.bf16.mxu0 %vm1653_vm12, %v1612_v33  ;;  %v462_v34 = vpop.permute.xlu1 %461 }
 0x115   : > { %547 = vst.msk [vmem:[#allocation2 + $0x58] sm:$0xff] %vm535_vm4, %v462_v34  ;;  %v460_v37 = vpop.permute.xlu0 %459 }
 0x116   : > { %546 = vst.msk [vmem:[#allocation2 + $0x50] sm:$0xff] %vm535_vm4, %v460_v37  ;;  %1475 = vrot.lane.b32.xlu1 %v2946_v9, %s2391_s30 }
 0x117   : > { %1473 = vrot.lane.b32.xlu0 %v2949_v11, %s2391_s30 }
 0x118   : > { %v668_v40 = vpop.permute.xlu1 %667  ;;  %v1585_v41 = vld [vmem:[#allocation2 + $0x38] sm:$0xff] }
 0x119   : > { %755 = vst.msk [vmem:[#allocation2 + $0x48] sm:$0xff] %vm745_vm5, %v668_v40  ;;  %v666_v43 = vpop.permute.xlu0 %665  ;;  %v1584_v44 = vld [vmem:[#allocation2 + $0x30] sm:$0xff] }
 0x11a   : > { %754 = vst.msk [vmem:[#allocation2 + $0x40] sm:$0xff] %vm745_vm5, %v666_v43  ;;  %473 = vrot.lane.b32.xlu1 %v2926_v62, %s2384_s10  ;;  %v1613_v45 = vpack.c.bf16 %v1585_v41, %v1584_v44  ;;  %v625_v44 = vrot.slane %v2817_v12, 2 }
 0x11b   : > { %471 = vrot.lane.b32.xlu0 %v2929_v0, %s2384_s10  ;;  %v3061_v0 = vld [vmem:[%s2481_s9 + $0x150] sm:$0xff] }
 0x11c   : > { %2206 = vmatmul.mubr.msk.bf16.gmra.mrb[4].mxu0 %vm1653_vm12, %v1613_v45  ;;  %v672_v47 = vpop.permute.xlu1 %671  ;;  %306 = vst.msk [vmem:[#allocation2 + $0xe0] sm:$0xff] %vm277_vm0, %v3061_v0  ;;  %v627_v45 = vrot.slane %v258_v24, 2 }
 0x11d   : > { %757 = vst.msk [vmem:[#allocation2 + $0x58] sm:$0xff] %vm745_vm5, %v672_v47  ;;  %v670_v25 = vpop.permute.xlu0 %669 }
 0x11e   : > { %756 = vst.msk [vmem:[#allocation2 + $0x50] sm:$0xff] %vm745_vm5, %v670_v25  ;;  %1479 = vrot.lane.b32.xlu1 %v3016_v46, %s2391_s30 }
 0x11f   : > { %1477 = vrot.lane.b32.xlu0 %v3020_v50, %s2391_s30 }
 0x120   : > { %v799_v26 = vpop.permute.xlu1 %798 }
 0x121   : > { %886 = vst.msk [vmem:[#allocation2 + $0x48] sm:$0xff] %vm876_vm6, %v799_v26  ;;  %v797_v53 = vpop.permute.xlu0 %796 }
 0x122   : > { %885 = vst.msk [vmem:[#allocation2 + $0x40] sm:$0xff] %vm876_vm6, %v797_v53  ;;  %477 = vrot.lane.b32.xlu1 %v2989_v27, %s2384_s10 }
 0x123   : > { %475 = vrot.lane.b32.xlu0 %v2992_v29, %s2384_s10 }
 0x124   : > { %v803_v54 = vpop.permute.xlu1 %802 }
 0x125   : > { %888 = vst.msk [vmem:[#allocation2 + $0x58] sm:$0xff] %vm876_vm6, %v803_v54  ;;  %v801_v55 = vpop.permute.xlu0 %800  ;;  %v3168_v54 = vsel %vm568_vm2, %v625_v44, %v627_v45 }
 0x126   : > { %887 = vst.msk [vmem:[#allocation2 + $0x50] sm:$0xff] %vm876_vm6, %v801_v55  ;;  %683 = vrot.lane.b32.xlu1 %v2946_v9, %s2385_s11 }
 0x127   : > { %681 = vrot.lane.b32.xlu0 %v2949_v11, %s2385_s11  ;;  %v622_v11 = vrot.slane %v255_v61, 2 }
 0x128   : > { %v934_v56 = vpop.permute.xlu1 %933 }
 0x129   : > { %1021 = vst.msk [vmem:[#allocation2 + $0x48] sm:$0xff] %vm1011_vm7, %v934_v56  ;;  %v932_v48 = vpop.permute.xlu0 %931  ;;  %v3098_v17 = vsel %vm568_vm2, %v620_v10, %v622_v11 }
 0x12a   : > { %1020 = vst.msk [vmem:[#allocation2 + $0x40] sm:$0xff] %vm1011_vm7, %v932_v48  ;;  %687 = vrot.lane.b32.xlu1 %v3016_v46, %s2385_s11 }
 0x12b   : > { %685 = vrot.lane.b32.xlu0 %v3020_v50, %s2385_s11 }
 0x12c   : > { %v938_v49 = vpop.permute.xlu1 %937 }
 0x12d   : > { %1023 = vst.msk [vmem:[#allocation2 + $0x58] sm:$0xff] %vm1011_vm7, %v938_v49  ;;  %v936_v59 = vpop.permute.xlu0 %935 }
 0x12e   : > { %1022 = vst.msk [vmem:[#allocation2 + $0x50] sm:$0xff] %vm1011_vm7, %v936_v59  ;;  %814 = vrot.lane.b32.xlu1 %v2677_v14, %s2386_s12  ;;  %v410_v14 = vrot.slane %v2754_v51, 1 }
 0x12f   : > { %812 = vrot.lane.b32.xlu0 %v2680_v15, %s2386_s12  ;;  %v412_v15 = vrot.slane %v255_v61, 1 }
 0x130   : > { %v1068_v60 = vpop.permute.xlu1 %1067  ;;  %v3081_v8 = vsel %vm358_vm1, %v409_v4, %v410_v14 }
 0x131   : > { %1155 = vst.msk [vmem:[#allocation2 + $0x48] sm:$0xff] %vm1145_vm8, %v1068_v60  ;;  %v1066_v62 = vpop.permute.xlu0 %1065  ;;  %v3078_v6 = vsel %vm358_vm1, %v410_v14, %v412_v15 }
 0x132   : > { %1154 = vst.msk [vmem:[#allocation2 + $0x40] sm:$0xff] %vm1145_vm8, %v1066_v62  ;;  %818 = vrot.lane.b32.xlu1 %v2754_v51, %s2386_s12 }
 0x133   : > { %816 = vrot.lane.b32.xlu0 %v2757_v52, %s2386_s12 }
 0x134   : > { %v1072_v3 = vpop.permute.xlu1 %1071 }
 0x135   : > { %1157 = vst.msk [vmem:[#allocation2 + $0x58] sm:$0xff] %vm1145_vm8, %v1072_v3  ;;  %v1070_v5 = vpop.permute.xlu0 %1069 }
 0x136   : > { %1156 = vst.msk [vmem:[#allocation2 + $0x50] sm:$0xff] %vm1145_vm8, %v1070_v5  ;;  %949 = vrot.lane.b32.xlu1 %v2989_v27, %s2387_s13  ;;  %v261_v5 = vld [vmem:[%s2481_s9 + $0x130] sm:$0x3] }
 0x137   : > { %947 = vrot.lane.b32.xlu0 %v2992_v29, %s2387_s13  ;;  %v3124_v29 = vld [vmem:[%s2481_s9 + $0x168] sm:$0xff] }
 0x138   : > { %v1199_v7 = vpop.permute.xlu1 %1198  ;;  %308 = vst.msk [vmem:[#allocation2 + $0xf0] sm:$0xff] %vm277_vm0, %v3124_v29 }
 0x139   : > { %1286 = vst.msk [vmem:[#allocation2 + $0x48] sm:$0xff] %vm1276_vm9, %v1199_v7  ;;  %v1197_v9 = vpop.permute.xlu0 %1196  ;;  %v420_v7 = vrot.slane %v2906_v57, 1 }
 0x13a   : > { %1285 = vst.msk [vmem:[#allocation2 + $0x40] sm:$0xff] %vm1276_vm9, %v1197_v9  ;;  %953 = vrot.lane.b32.xlu1 %v3078_v6, %s2387_s13  ;;  %v419_v9 = vrot.slane %v2909_v58, 1 }
 0x13b   : > { %951 = vrot.lane.b32.xlu0 %v3081_v8, %s2387_s13 }
 0x13c   : > { %v1203_v35 = vpop.permute.xlu1 %1202 }
 0x13d   : > { %1288 = vst.msk [vmem:[#allocation2 + $0x58] sm:$0xff] %vm1276_vm9, %v1203_v35  ;;  %v1201_v16 = vpop.permute.xlu0 %1200  ;;  %v3219_v35 = vsel %vm358_vm1, %v419_v9, %v420_v7  ;;  %v267_v9 = vld [vmem:[%s2481_s9 + $0x160] sm:$0x3] }
 0x13e   : > { %1287 = vst.msk [vmem:[#allocation2 + $0x50] sm:$0xff] %vm1276_vm9, %v1201_v16  ;;  %1083 = vrot.lane.b32.xlu1 %v3016_v46, %s2388_s14  ;;  %v630_v16 = vrot.slane %v2906_v57, 2 }
 0x13f   : > { %1081 = vrot.lane.b32.xlu0 %v3020_v50, %s2388_s14  ;;  %v624_v50 = vrot.slane %v2820_v13, 2 }
 0x140   : > { %v1334_v18 = vpop.permute.xlu1 %1333 }
 0x141   : > { %1421 = vst.msk [vmem:[#allocation2 + $0x48] sm:$0xff] %vm1411_vm10, %v1334_v18  ;;  %v1332_v1 = vpop.permute.xlu0 %1331  ;;  %v626_v56 = vsel %vm568_vm2, %v624_v50, %v625_v44 }
 0x142   : > { %1420 = vst.msk [vmem:[#allocation2 + $0x40] sm:$0xff] %vm1411_vm10, %v1332_v1  ;;  %1087 = vrot.lane.b32.xlu1 %v3098_v17, %s2388_s14 }
 0x143   : > { %1085 = vrot.lane.b32.xlu0 %v3101_v19, %s2388_s14 }
 0x144   : > { %v1338_v2 = vpop.permute.xlu1 %1337 }
 0x145   : > { %1423 = vst.msk [vmem:[#allocation2 + $0x58] sm:$0xff] %vm1411_vm10, %v1338_v2  ;;  %v1336_v22 = vpop.permute.xlu0 %1335 }
 0x146   : > { %1422 = vst.msk [vmem:[#allocation2 + $0x50] sm:$0xff] %vm1411_vm10, %v1336_v22  ;;  %1214 = vrot.lane.b32.xlu1 %v2754_v51, %s2389_s15  ;;  %v415_v51 = vrot.slane %v2817_v12, 1 }
 0x147   : > { %1212 = vrot.lane.b32.xlu0 %v2757_v52, %s2389_s15  ;;  %v417_v52 = vrot.slane %v258_v24, 1 }
 0x148   : > { %v1468_v23 = vpop.permute.xlu1 %1467  ;;  %v3144_v37 = vsel %vm358_vm1, %v414_v31, %v415_v51 }
 0x149   : > { %1555 = vst.msk [vmem:[#allocation2 + $0x48] sm:$0xff] %vm1545_vm11, %v1468_v23  ;;  %v1466_v27 = vpop.permute.xlu0 %1465  ;;  %v3141_v33 = vsel %vm358_vm1, %v415_v51, %v417_v52 }
 0x14a   : > { %1554 = vst.msk [vmem:[#allocation2 + $0x40] sm:$0xff] %vm1545_vm11, %v1466_v27  ;;  %1218 = vrot.lane.b32.xlu1 %v2817_v12, %s2389_s15 }
 0x14b   : > { %1216 = vrot.lane.b32.xlu0 %v2820_v13, %s2389_s15 }
 0x14c   : > { %v466_v30 = vpop.permute.xlu1 %465 }
 0x14d   : > { %549 = vst.msk [vmem:[#allocation2 + $0x68] sm:$0xff] %vm535_vm4, %v466_v30  ;;  %v464_v32 = vpop.permute.xlu0 %463  ;;  %v264_v30 = vld [vmem:[%s2481_s9 + $0x148] sm:$0x3] }
 0x14e   : > { %548 = vst.msk [vmem:[#allocation2 + $0x60] sm:$0xff] %vm535_vm4, %v464_v32  ;;  %1349 = vrot.lane.b32.xlu1 %v3078_v6, %s2390_s16  ;;  %v425_v32 = vrot.slane %v2969_v20, 1 }
 0x14f   : > { %1347 = vrot.lane.b32.xlu0 %v3081_v8, %s2390_s16 }
 0x150   : > { %v1472_v34 = vpop.permute.xlu1 %1471  ;;  %v1587_v38 = vld [vmem:[#allocation2 + $0x48] sm:$0xff] }
 0x151   : > { %1557 = vst.msk [vmem:[#allocation2 + $0x58] sm:$0xff] %vm1545_vm11, %v1472_v34  ;;  %v1470_v39 = vpop.permute.xlu0 %1469  ;;  %v1586_v40 = vld [vmem:[#allocation2 + $0x40] sm:$0xff]  ;;  %v424_v34 = vrot.slane %v2972_v21, 1 }
 0x152   : > { %1556 = vst.msk [vmem:[#allocation2 + $0x50] sm:$0xff] %vm1545_vm11, %v1470_v39  ;;  %1353 = vrot.lane.b32.xlu1 %v3141_v33, %s2390_s16  ;;  %v1614_v41 = vpack.c.bf16 %v1587_v38, %v1586_v40 }
 0x153   : > { %1351 = vrot.lane.b32.xlu0 %v3144_v37, %s2390_s16  ;;  %v3271_v39 = vsel %vm358_vm1, %v424_v34, %v425_v32 }
 0x154   : > { %2209 = vmatprep.mubr.msk.bf16.mxu0 %vm1653_vm12, %v1614_v41  ;;  %v470_v42 = vpop.permute.xlu1 %469 }
 0x155   : > { %551 = vst.msk [vmem:[#allocation2 + $0x78] sm:$0xff] %vm535_vm4, %v470_v42  ;;  %v468_v43 = vpop.permute.xlu0 %467 }
 0x156   : > { %550 = vst.msk [vmem:[#allocation2 + $0x70] sm:$0xff] %vm535_vm4, %v468_v43  ;;  %1483 = vrot.lane.b32.xlu1 %v3098_v17, %s2391_s30 }
 0x157   : > { %1481 = vrot.lane.b32.xlu0 %v3101_v19, %s2391_s30 }
 0x158   : > { %v676_v46 = vpop.permute.xlu1 %675  ;;  %v1589_v47 = vld [vmem:[#allocation2 + $0x58] sm:$0xff] }
 0x159   : > { %759 = vst.msk [vmem:[#allocation2 + $0x68] sm:$0xff] %vm745_vm5, %v676_v46  ;;  %v674_v25 = vpop.permute.xlu0 %673  ;;  %v1588_v26 = vld [vmem:[#allocation2 + $0x50] sm:$0xff]  ;;  %v635_v46 = vrot.slane %v2969_v20, 2 }
 0x15a   : > { %758 = vst.msk [vmem:[#allocation2 + $0x60] sm:$0xff] %vm745_vm5, %v674_v25  ;;  %481 = vrot.lane.b32.xlu1 %v3078_v6, %s2384_s10  ;;  %v1615_v53 = vpack.c.bf16 %v1589_v47, %v1588_v26  ;;  %v637_v47 = vrot.slane %v264_v30, 2  ;;  %v634_v26 = vrot.slane %v2972_v21, 2 }
 0x15b   : > { %479 = vrot.lane.b32.xlu0 %v3081_v8, %s2384_s10  ;;  %v422_v8 = vrot.slane %v261_v5, 1 }
 0x15c   : > { %2210 = vmatmul.mubr.msk.bf16.gmra.mrb[8].mxu0 %vm1653_vm12, %v1615_v53  ;;  %v680_v55 = vpop.permute.xlu1 %679 }
 0x15d   : > { %761 = vst.msk [vmem:[#allocation2 + $0x78] sm:$0xff] %vm745_vm5, %v680_v55  ;;  %v678_v48 = vpop.permute.xlu0 %677  ;;  %v3216_v10 = vsel %vm358_vm1, %v420_v7, %v422_v8 }
 0x15e   : > { %760 = vst.msk [vmem:[#allocation2 + $0x70] sm:$0xff] %vm745_vm5, %v678_v48  ;;  %1487 = vrot.lane.b32.xlu1 %v3168_v54, %s2391_s30 }
 0x15f   : > { %1485 = vrot.lane.b32.xlu0 %v626_v56, %s2391_s30 }
 0x160   : > { %v807_v49 = vpop.permute.xlu1 %806 }
 0x161   : > { %890 = vst.msk [vmem:[#allocation2 + $0x68] sm:$0xff] %vm876_vm6, %v807_v49  ;;  %v805_v59 = vpop.permute.xlu0 %804  ;;  %v3299_v49 = vsel %vm568_vm2, %v634_v26, %v635_v46  ;;  %v434_v26 = vrot.slane %v3124_v29, 1 }
 0x162   : > { %889 = vst.msk [vmem:[#allocation2 + $0x60] sm:$0xff] %vm876_vm6, %v805_v59  ;;  %485 = vrot.lane.b32.xlu1 %v3141_v33, %s2384_s10 }
 0x163   : > { %483 = vrot.lane.b32.xlu0 %v3144_v37, %s2384_s10 }
 0x164   : > { %v811_v60 = vpop.permute.xlu1 %810 }
 0x165   : > { %892 = vst.msk [vmem:[#allocation2 + $0x78] sm:$0xff] %vm876_vm6, %v811_v60  ;;  %v809_v61 = vpop.permute.xlu0 %808 }
 0x166   : > { %891 = vst.msk [vmem:[#allocation2 + $0x70] sm:$0xff] %vm876_vm6, %v809_v61  ;;  %691 = vrot.lane.b32.xlu1 %v3098_v17, %s2385_s11  ;;  %v632_v17 = vrot.slane %v261_v5, 2 }
 0x167   : > { %689 = vrot.lane.b32.xlu0 %v3101_v19, %s2385_s11  ;;  %v629_v19 = vrot.slane %v2909_v58, 2 }
 0x168   : > { %v942_v62 = vpop.permute.xlu1 %941  ;;  %v3235_v2 = vsel %vm568_vm2, %v630_v16, %v632_v17 }
 0x169   : > { %1025 = vst.msk [vmem:[#allocation2 + $0x68] sm:$0xff] %vm1011_vm7, %v942_v62  ;;  %v940_v14 = vpop.permute.xlu0 %939  ;;  %v3238_v23 = vsel %vm568_vm2, %v629_v19, %v630_v16  ;;  %v432_v16 = vrot.slane %v267_v9, 1 }
 0x16a   : > { %1024 = vst.msk [vmem:[#allocation2 + $0x60] sm:$0xff] %vm1011_vm7, %v940_v14  ;;  %695 = vrot.lane.b32.xlu1 %v3168_v54, %s2385_s11 }
 0x16b   : > { %693 = vrot.lane.b32.xlu0 %v626_v56, %s2385_s11 }
 0x16c   : > { %v946_v15 = vpop.permute.xlu1 %945 }
 0x16d   : > { %1027 = vst.msk [vmem:[#allocation2 + $0x78] sm:$0xff] %vm1011_vm7, %v946_v15  ;;  %v944_v3 = vpop.permute.xlu0 %943 }
 0x16e   : > { %1026 = vst.msk [vmem:[#allocation2 + $0x70] sm:$0xff] %vm1011_vm7, %v944_v3  ;;  %822 = vrot.lane.b32.xlu1 %v2817_v12, %s2386_s12 }
 0x16f   : > { %820 = vrot.lane.b32.xlu0 %v2820_v13, %s2386_s12 }
 0x170   : > { %v1076_v4 = vpop.permute.xlu1 %1075 }
 0x171   : > { %1159 = vst.msk [vmem:[#allocation2 + $0x68] sm:$0xff] %vm1145_vm8, %v1076_v4  ;;  %v1074_v6 = vpop.permute.xlu0 %1073 }
 0x172   : > { %1158 = vst.msk [vmem:[#allocation2 + $0x60] sm:$0xff] %vm1145_vm8, %v1074_v6  ;;  %826 = vrot.lane.b32.xlu1 %v2906_v57, %s2386_s12  ;;  %v3332_v6 = vld [vmem:[%s3711_s2] ss:$0 sm:$0xff] }
 0x173   : > { %824 = vrot.lane.b32.xlu0 %v2909_v58, %s2386_s12 }
 0x174   : > { %v1080_v12 = vpop.permute.xlu1 %1079 }
 0x175   : > { %1161 = vst.msk [vmem:[#allocation2 + $0x78] sm:$0xff] %vm1145_vm8, %v1080_v12  ;;  %v1078_v13 = vpop.permute.xlu0 %1077 }
 0x176   : > { %1160 = vst.msk [vmem:[#allocation2 + $0x70] sm:$0xff] %vm1145_vm8, %v1078_v13  ;;  %957 = vrot.lane.b32.xlu1 %v3141_v33, %s2387_s13  ;;  %v427_v33 = vrot.slane %v264_v30, 1 }
 0x177   : > { %955 = vrot.lane.b32.xlu0 %v3144_v37, %s2387_s13 }
 0x178   : > { %v1207_v11 = vpop.permute.xlu1 %1206  ;;  %v3268_v37 = vsel %vm358_vm1, %v425_v32, %v427_v33  ;;  %v640_v33 = vrot.slane %v3058_v63, 2 }
 0x179   : > { %1290 = vst.msk [vmem:[#allocation2 + $0x68] sm:$0xff] %vm1276_vm9, %v1207_v11  ;;  %v1205_v36 = vpop.permute.xlu0 %1204 }
 0x17a   : > { %1289 = vst.msk [vmem:[#allocation2 + $0x60] sm:$0xff] %vm1276_vm9, %v1205_v36  ;;  %961 = vrot.lane.b32.xlu1 %v3216_v10, %s2387_s13  ;;  %v430_v36 = vrot.slane %v3058_v63, 1 }
 0x17b   : > { %959 = vrot.lane.b32.xlu0 %v3219_v35, %s2387_s13 }
 0x17c   : > { %v1211_v18 = vpop.permute.xlu1 %1210 }
 0x17d   : > { %1292 = vst.msk [vmem:[#allocation2 + $0x78] sm:$0xff] %vm1276_vm9, %v1211_v18  ;;  %v1209_v1 = vpop.permute.xlu0 %1208  ;;  %v429_v18 = vrot.slane %v3061_v0, 1 }
 0x17e   : > { %1291 = vst.msk [vmem:[#allocation2 + $0x70] sm:$0xff] %vm1276_vm9, %v1209_v1  ;;  %1091 = vrot.lane.b32.xlu1 %v3168_v54, %s2388_s14 }
 0x17f   : > { %1089 = vrot.lane.b32.xlu0 %v626_v56, %s2388_s14  ;;  %v3295_v56 = vsel %vm568_vm2, %v635_v46, %v637_v47  ;;  %v270_v46 = vld [vmem:[%s2481_s9 + $0x178] sm:$0x3] }
 0x180   : > { %v1342_v22 = vpop.permute.xlu1 %1341 }
 0x181   : > { %1425 = vst.msk [vmem:[#allocation2 + $0x68] sm:$0xff] %vm1411_vm10, %v1342_v22  ;;  %v1340_v24 = vpop.permute.xlu0 %1339 }
 0x182   : > { %1424 = vst.msk [vmem:[#allocation2 + $0x60] sm:$0xff] %vm1411_vm10, %v1340_v24  ;;  %1095 = vrot.lane.b32.xlu1 %v3235_v2, %s2388_s14 }
 0x183   : > { %1093 = vrot.lane.b32.xlu0 %v3238_v23, %s2388_s14 }
 0x184   : > { %v1346_v27 = vpop.permute.xlu1 %1345 }
 0x185   : > { %1427 = vst.msk [vmem:[#allocation2 + $0x78] sm:$0xff] %vm1411_vm10, %v1346_v27  ;;  %v1344_v51 = vpop.permute.xlu0 %1343  ;;  %v3356_v27 = vsel %vm358_vm1, %v430_v36, %v432_v16 }
 0x186   : > { %1426 = vst.msk [vmem:[#allocation2 + $0x70] sm:$0xff] %vm1411_vm10, %v1344_v51  ;;  %1222 = vrot.lane.b32.xlu1 %v2906_v57, %s2389_s15 }
 0x187   : > { %1220 = vrot.lane.b32.xlu0 %v2909_v58, %s2389_s15 }
 0x188   : > { %v1476_v52 = vpop.permute.xlu1 %1475 }
 0x189   : > { %1559 = vst.msk [vmem:[#allocation2 + $0x68] sm:$0xff] %vm1545_vm11, %v1476_v52  ;;  %v1474_v31 = vpop.permute.xlu0 %1473  ;;  %v3359_v52 = vsel %vm358_vm1, %v429_v18, %v430_v36 }
 0x18a   : > { %1558 = vst.msk [vmem:[#allocation2 + $0x60] sm:$0xff] %vm1545_vm11, %v1474_v31  ;;  %1226 = vrot.lane.b32.xlu1 %v2969_v20, %s2389_s15 }
 0x18b   : > { %1224 = vrot.lane.b32.xlu0 %v2972_v21, %s2389_s15 }
 0x18c   : > { %v474_v57 = vpop.permute.xlu1 %473 }
 0x18d   : > { %553 = vst.msk [vmem:[#allocation2 + $0x88] sm:$0xff] %vm535_vm4, %v474_v57  ;;  %v472_v58 = vpop.permute.xlu0 %471  ;;  %v642_v57 = vrot.slane %v267_v9, 2 }
 0x18e   : > { %552 = vst.msk [vmem:[#allocation2 + $0x80] sm:$0xff] %vm535_vm4, %v472_v58  ;;  %1357 = vrot.lane.b32.xlu1 %v3216_v10, %s2390_s16 }
 0x18f   : > { %1355 = vrot.lane.b32.xlu0 %v3219_v35, %s2390_s16 }
 0x190   : > { %v1480_v38 = vpop.permute.xlu1 %1479  ;;  %v1591_v40 = vld [vmem:[#allocation2 + $0x68] sm:$0xff] }
 0x191   : > { %1561 = vst.msk [vmem:[#allocation2 + $0x78] sm:$0xff] %vm1545_vm11, %v1480_v38  ;;  %v1478_v41 = vpop.permute.xlu0 %1477  ;;  %v1590_v42 = vld [vmem:[#allocation2 + $0x60] sm:$0xff] }
 0x192   : > { %1560 = vst.msk [vmem:[#allocation2 + $0x70] sm:$0xff] %vm1545_vm11, %v1478_v41  ;;  %1361 = vrot.lane.b32.xlu1 %v3268_v37, %s2390_s16  ;;  %v1616_v43 = vpack.c.bf16 %v1591_v40, %v1590_v42 }
 0x193   : > { %1359 = vrot.lane.b32.xlu0 %v3271_v39, %s2390_s16 }
 0x194   : > { %2213 = vmatprep.mubr.msk.bf16.mxu0 %vm1653_vm12, %v1616_v43  ;;  %v478_v44 = vpop.permute.xlu1 %477 }
 0x195   : > { %555 = vst.msk [vmem:[#allocation2 + $0x98] sm:$0xff] %vm535_vm4, %v478_v44  ;;  %v476_v45 = vpop.permute.xlu0 %475 }
 0x196   : > { %554 = vst.msk [vmem:[#allocation2 + $0x90] sm:$0xff] %vm535_vm4, %v476_v45  ;;  %1491 = vrot.lane.b32.xlu1 %v3235_v2, %s2391_s30 }
 0x197   : > { %1489 = vrot.lane.b32.xlu0 %v3238_v23, %s2391_s30 }
 0x198   : > { %v684_v50 = vpop.permute.xlu1 %683  ;;  %v1593_v25 = vld [vmem:[#allocation2 + $0x78] sm:$0xff] }
 0x199   : > { %763 = vst.msk [vmem:[#allocation2 + $0x88] sm:$0xff] %vm745_vm5, %v684_v50  ;;  %v682_v53 = vpop.permute.xlu0 %681  ;;  %v1592_v54 = vld [vmem:[#allocation2 + $0x70] sm:$0xff]  ;;  %v435_v50 = vrot.slane %v3121_v28, 1 }
 0x19a   : > { %762 = vst.msk [vmem:[#allocation2 + $0x80] sm:$0xff] %vm745_vm5, %v682_v53  ;;  %489 = vrot.lane.b32.xlu1 %v3216_v10, %s2384_s10  ;;  %v1617_v55 = vpack.c.bf16 %v1593_v25, %v1592_v54  ;;  %v437_v25 = vrot.slane %v270_v46, 1 }
 0x19b   : > { %487 = vrot.lane.b32.xlu0 %v3219_v35, %s2384_s10 }
 0x19c   : > { %2214 = vmatmul.mubr.msk.bf16.gmra.mrb[12].mxu0 %vm1653_vm12, %v1617_v55  ;;  %v688_v48 = vpop.permute.xlu1 %687  ;;  %v3411_v53 = vsel %vm358_vm1, %v435_v50, %v437_v25  ;;  %v3414_v55 = vsel %vm358_vm1, %v434_v26, %v435_v50 }
 0x19d   : > { %765 = vst.msk [vmem:[#allocation2 + $0x98] sm:$0xff] %vm745_vm5, %v688_v48  ;;  %v686_v59 = vpop.permute.xlu0 %685 }
 0x19e   : > { %764 = vst.msk [vmem:[#allocation2 + $0x90] sm:$0xff] %vm745_vm5, %v686_v59  ;;  %1495 = vrot.lane.b32.xlu1 %v3295_v56, %s2391_s30 }
 0x19f   : > { %1493 = vrot.lane.b32.xlu0 %v3299_v49, %s2391_s30 }
 0x1a0   : > { %v815_v60 = vpop.permute.xlu1 %814 }
 0x1a1   : > { %894 = vst.msk [vmem:[#allocation2 + $0x88] sm:$0xff] %vm876_vm6, %v815_v60  ;;  %v813_v61 = vpop.permute.xlu0 %812 }
 0x1a2   : > { %893 = vst.msk [vmem:[#allocation2 + $0x80] sm:$0xff] %vm876_vm6, %v813_v61  ;;  %493 = vrot.lane.b32.xlu1 %v3268_v37, %s2384_s10 }
 0x1a3   : > { %491 = vrot.lane.b32.xlu0 %v3271_v39, %s2384_s10 }
 0x1a4   : > { %v819_v62 = vpop.permute.xlu1 %818 }
 0x1a5   : > { %896 = vst.msk [vmem:[#allocation2 + $0x98] sm:$0xff] %vm876_vm6, %v819_v62  ;;  %v817_v14 = vpop.permute.xlu0 %816  ;;  %v645_v62 = vrot.slane %v3121_v28, 2 }
 0x1a6   : > { %895 = vst.msk [vmem:[#allocation2 + $0x90] sm:$0xff] %vm876_vm6, %v817_v14  ;;  %699 = vrot.lane.b32.xlu1 %v3235_v2, %s2385_s11  ;;  %v647_v14 = vrot.slane %v270_v46, 2 }
 0x1a7   : > { %697 = vrot.lane.b32.xlu0 %v3238_v23, %s2385_s11 }
 0x1a8   : > { %v950_v15 = vpop.permute.xlu1 %949 }
 0x1a9   : > { %1029 = vst.msk [vmem:[#allocation2 + $0x88] sm:$0xff] %vm1011_vm7, %v950_v15  ;;  %v948_v3 = vpop.permute.xlu0 %947 }
 0x1aa   : > { %1028 = vst.msk [vmem:[#allocation2 + $0x80] sm:$0xff] %vm1011_vm7, %v948_v3  ;;  %703 = vrot.lane.b32.xlu1 %v3295_v56, %s2385_s11 }
 0x1ab   : > { %701 = vrot.lane.b32.xlu0 %v3299_v49, %s2385_s11 }
 0x1ac   : > { %v954_v4 = vpop.permute.xlu1 %953 }
 0x1ad   : > { %1031 = vst.msk [vmem:[#allocation2 + $0x98] sm:$0xff] %vm1011_vm7, %v954_v4  ;;  %v952_v5 = vpop.permute.xlu0 %951  ;;  %v644_v4 = vrot.slane %v3124_v29, 2 }
 0x1ae   : > { %1030 = vst.msk [vmem:[#allocation2 + $0x90] sm:$0xff] %vm1011_vm7, %v952_v5  ;;  %830 = vrot.lane.b32.xlu1 %v2969_v20, %s2386_s12 }
 0x1af   : > { %828 = vrot.lane.b32.xlu0 %v2972_v21, %s2386_s12  ;;  %v2203_v7 = vpop.f32.mrb[0].mxu0 }
 0x1b0   : > { %v1740_v8 = vpop.f32.mrb[1].mxu0  ;;  %v1084_v12 = vpop.permute.xlu1 %1083  ;;  %v1749_v35 = vadd.f32 %v2203_v7, %v3332_v6 }
 0x1b1   : > { %v1741_v13 = vadd.f32 %v3332_v6, %v1740_v8  ;;  %1163 = vst.msk [vmem:[#allocation2 + $0x88] sm:$0xff] %vm1145_vm8, %v1084_v12  ;;  %v1082_v10 = vpop.permute.xlu0 %1081  ;;  %v2204_v11 = vpop.f32.mrb[2].mxu0  ;;  %v3438_v12 = vsel %vm568_vm2, %v645_v62, %v647_v14  ;;  %v276_v14 = vld [vmem:[%s2481_s9 + $0x1a8] sm:$0x3] }
 0x1b2   : > { %1162 = vst.msk [vmem:[#allocation2 + $0x80] sm:$0xff] %vm1145_vm8, %v1082_v10  ;;  %v1743_v20 = vpop.f32.mrb[3].mxu0  ;;  %834 = vrot.lane.b32.xlu1 %v3058_v63, %s2386_s12  ;;  %v1752_v1 = vadd.f32 %v2204_v11, %v3332_v6  ;;  %v1869_v23 = vmax.f32 %v1749_v35, 0.0 }
 0x1b3   : > { %v1744_v21 = vadd.f32 %v3332_v6, %v1743_v20  ;;  %832 = vrot.lane.b32.xlu0 %v3061_v0, %s2386_s12  ;;  %v1867_v19 = vmax.f32 %v1741_v13, 0.0  ;;  %v3442_v13 = vsel %vm568_vm2, %v644_v4, %v645_v62  ;;  %v274_v62 = vld [vmem:[%s2481_s9 + $0x198] sm:$0xff]  ;;  %v1313_v4 = vrot.slane %v276_v14, 1 }
 0x1b4   : > { %v1088_v17 = vpop.permute.xlu1 %1087  ;;  %v1870_v30 = vmax.f32 %v1752_v1, 0.0  ;;  %v272_v1 = vld [vmem:[%s2481_s9 + $0x188] sm:$0xff] }
 0x1b5   : > { %v1868_v2 = vmax.f32 %v1744_v21, 0.0  ;;  %1165 = vst.msk [vmem:[#allocation2 + $0x98] sm:$0xff] %vm1145_vm8, %v1088_v17  ;;  %v1086_v22 = vpop.permute.xlu0 %1085  ;;  %v1045_v50 = vrot.slane %v272_v1, 2 }
 0x1b6   : > { %1164 = vst.msk [vmem:[#allocation2 + $0x90] sm:$0xff] %vm1145_vm8, %v1086_v22  ;;  %965 = vrot.lane.b32.xlu1 %v3268_v37, %s2387_s13  ;;  %v639_v37 = vrot.slane %v3061_v0, 2 }
 0x1b7   : > { %v1899_v24 = vadd.f32 %v1868_v2, %v1867_v19  ;;  %963 = vrot.lane.b32.xlu0 %v3271_v39, %s2387_s13  ;;  %v3378_v39 = vsel %vm568_vm2, %v640_v33, %v642_v57 }
 0x1b8   : > { %v1215_v51 = vpop.permute.xlu1 %1214  ;;  %v3381_v41 = vsel %vm568_vm2, %v639_v37, %v640_v33 }
 0x1b9   : > { %v1900_v31 = vadd.f32 %v1899_v24, %v1869_v23  ;;  %1294 = vst.msk [vmem:[#allocation2 + $0x88] sm:$0xff] %vm1276_vm9, %v1215_v51  ;;  %v1213_v32 = vpop.permute.xlu0 %1212  ;;  %v271_v23 = vld [vmem:[%s2481_s9 + $0x180] sm:$0xff]  ;;  %v273_v24 = vld [vmem:[%s2481_s9 + $0x190] sm:$0x3] }
 0x1ba   : > { %1293 = vst.msk [vmem:[#allocation2 + $0x80] sm:$0xff] %vm1276_vm9, %v1213_v32  ;;  %969 = vrot.lane.b32.xlu1 %v3356_v27, %s2387_s13  ;;  %v913_v33 = vrot.slane %v273_v24, 1  ;;  %v910_v57 = vrot.slane %v271_v23, 1  ;;  %v1047_v25 = vrot.slane %v273_v24, 2  ;;  %v1044_v26 = vrot.slane %v271_v23, 2 }
 0x1bb   : > { %967 = vrot.lane.b32.xlu0 %v3359_v52, %s2387_s13  ;;  %v3368_v34 = vadd.f32 %v1900_v31, %v1870_v30  ;;  %v911_v31 = vrot.slane %v272_v1, 1 }
 0x1bc   : > { %v1219_v58 = vpop.permute.xlu1 %1218 }
 0x1bd   : > { %1296 = vst.msk [vmem:[#allocation2 + $0x98] sm:$0xff] %vm1276_vm9, %v1219_v58  ;;  %v1217_v38 = vpop.permute.xlu0 %1216 }
 0x1be   : > { %1295 = vst.msk [vmem:[#allocation2 + $0x90] sm:$0xff] %vm1276_vm9, %v1217_v38  ;;  %1099 = vrot.lane.b32.xlu1 %v3295_v56, %s2388_s14 }
 0x1bf   : > { %1097 = vrot.lane.b32.xlu0 %v3299_v49, %s2388_s14 }
 0x1c0   : > { %v1350_v40 = vpop.permute.xlu1 %1349 }
 0x1c1   : > { %1429 = vst.msk [vmem:[#allocation2 + $0x88] sm:$0xff] %vm1411_vm10, %v1350_v40  ;;  %v1348_v42 = vpop.permute.xlu0 %1347 }
 0x1c2   : > { %1428 = vst.msk [vmem:[#allocation2 + $0x80] sm:$0xff] %vm1411_vm10, %v1348_v42  ;;  %1103 = vrot.lane.b32.xlu1 %v3378_v39, %s2388_s14 }
 0x1c3   : > { %1101 = vrot.lane.b32.xlu0 %v3381_v41, %s2388_s14 }
 0x1c4   : > { %v1354_v43 = vpop.permute.xlu1 %1353 }
 0x1c5   : > { %1431 = vst.msk [vmem:[#allocation2 + $0x98] sm:$0xff] %vm1411_vm10, %v1354_v43  ;;  %v1352_v44 = vpop.permute.xlu0 %1351  ;;  %v914_v43 = vsel %vm358_vm1, %v911_v31, %v913_v33 }
 0x1c6   : > { %1430 = vst.msk [vmem:[#allocation2 + $0x90] sm:$0xff] %vm1411_vm10, %v1352_v44  ;;  %1230 = vrot.lane.b32.xlu1 %v3058_v63, %s2389_s15 }
 0x1c7   : > { %1228 = vrot.lane.b32.xlu0 %v3061_v0, %s2389_s15 }
 0x1c8   : > { %v1484_v45 = vpop.permute.xlu1 %1483 }
 0x1c9   : > { %1563 = vst.msk [vmem:[#allocation2 + $0x88] sm:$0xff] %vm1545_vm11, %v1484_v45  ;;  %v1482_v47 = vpop.permute.xlu0 %1481 }
 0x1ca   : > { %1562 = vst.msk [vmem:[#allocation2 + $0x80] sm:$0xff] %vm1545_vm11, %v1482_v47  ;;  %1234 = vrot.lane.b32.xlu1 %v3121_v28, %s2389_s15 }
 0x1cb   : > { %1232 = vrot.lane.b32.xlu0 %v3124_v29, %s2389_s15 }
 0x1cc   : > { %v482_v63 = vpop.permute.xlu1 %481 }
 0x1cd   : > { %557 = vst.msk [vmem:[#allocation2 + $0xa8] sm:$0xff] %vm535_vm4, %v482_v63  ;;  %v480_v0 = vpop.permute.xlu0 %479 }
 0x1ce   : > { %556 = vst.msk [vmem:[#allocation2 + $0xa0] sm:$0xff] %vm535_vm4, %v480_v0  ;;  %1365 = vrot.lane.b32.xlu1 %v3356_v27, %s2390_s16 }
 0x1cf   : > { %1363 = vrot.lane.b32.xlu0 %v3359_v52, %s2390_s16 }
 0x1d0   : > { %v1488_v54 = vpop.permute.xlu1 %1487  ;;  %v1595_v56 = vld [vmem:[#allocation2 + $0x88] sm:$0xff] }
 0x1d1   : > { %1565 = vst.msk [vmem:[#allocation2 + $0x98] sm:$0xff] %vm1545_vm11, %v1488_v54  ;;  %v1486_v48 = vpop.permute.xlu0 %1485  ;;  %v1594_v49 = vld [vmem:[#allocation2 + $0x80] sm:$0xff]  ;;  %v1048_v54 = vsel %vm568_vm2, %v1045_v50, %v1047_v25 }
 0x1d2   : > { %1564 = vst.msk [vmem:[#allocation2 + $0x90] sm:$0xff] %vm1545_vm11, %v1486_v48  ;;  %1369 = vrot.lane.b32.xlu1 %v3411_v53, %s2390_s16  ;;  %v1618_v59 = vpack.c.bf16 %v1595_v56, %v1594_v49  ;;  %v1046_v56 = vsel %vm568_vm2, %v1044_v26, %v1045_v50 }
 0x1d3   : > { %1367 = vrot.lane.b32.xlu0 %v3414_v55, %s2390_s16 }
 0x1d4   : > { %2217 = vmatprep.mubr.msk.bf16.mxu0 %vm1653_vm12, %v1618_v59  ;;  %v486_v60 = vpop.permute.xlu1 %485 }
 0x1d5   : > { %559 = vst.msk [vmem:[#allocation2 + $0xb8] sm:$0xff] %vm535_vm4, %v486_v60  ;;  %v484_v61 = vpop.permute.xlu0 %483  ;;  %v275_v60 = vld [vmem:[%s2481_s9 + $0x1a0] sm:$0xff] }
 0x1d6   : > { %558 = vst.msk [vmem:[#allocation2 + $0xb0] sm:$0xff] %vm535_vm4, %v484_v61  ;;  %1499 = vrot.lane.b32.xlu1 %v3378_v39, %s2391_s30 }
 0x1d7   : > { %1497 = vrot.lane.b32.xlu0 %v3381_v41, %s2391_s30 }
 0x1d8   : > { %v692_v15 = vpop.permute.xlu1 %691  ;;  %v1597_v3 = vld [vmem:[#allocation2 + $0x98] sm:$0xff] }
 0x1d9   : > { %767 = vst.msk [vmem:[#allocation2 + $0xa8] sm:$0xff] %vm745_vm5, %v692_v15  ;;  %v690_v5 = vpop.permute.xlu0 %689  ;;  %v1596_v7 = vld [vmem:[#allocation2 + $0x90] sm:$0xff] }
 0x1da   : > { %766 = vst.msk [vmem:[#allocation2 + $0xa0] sm:$0xff] %vm745_vm5, %v690_v5  ;;  %497 = vrot.lane.b32.xlu1 %v3356_v27, %s2384_s10  ;;  %v1619_v8 = vpack.c.bf16 %v1597_v3, %v1596_v7  ;;  %v1311_v3 = vrot.slane %v275_v60, 1  ;;  %v1310_v5 = vrot.slane %v274_v62, 1 }
 0x1db   : > { %495 = vrot.lane.b32.xlu0 %v3359_v52, %s2384_s10 }
 0x1dc   : > { %2218 = vmatmul.mubr.msk.bf16.gmra.mrb[16].mxu0 %vm1653_vm12, %v1619_v8  ;;  %v696_v9 = vpop.permute.xlu1 %695 }
 0x1dd   : > { %769 = vst.msk [vmem:[#allocation2 + $0xb8] sm:$0xff] %vm745_vm5, %v696_v9  ;;  %v694_v10 = vpop.permute.xlu0 %693 }
 0x1de   : > { %768 = vst.msk [vmem:[#allocation2 + $0xb0] sm:$0xff] %vm745_vm5, %v694_v10  ;;  %1503 = vrot.lane.b32.xlu1 %v3438_v12, %s2391_s30 }
 0x1df   : > { %1501 = vrot.lane.b32.xlu0 %v3442_v13, %s2391_s30 }
 0x1e0   : > { %v823_v11 = vpop.permute.xlu1 %822 }
 0x1e1   : > { %898 = vst.msk [vmem:[#allocation2 + $0xa8] sm:$0xff] %vm876_vm6, %v823_v11  ;;  %v821_v20 = vpop.permute.xlu0 %820 }
 0x1e2   : > { %897 = vst.msk [vmem:[#allocation2 + $0xa0] sm:$0xff] %vm876_vm6, %v821_v20  ;;  %501 = vrot.lane.b32.xlu1 %v3411_v53, %s2384_s10 }
 0x1e3   : > { %499 = vrot.lane.b32.xlu0 %v3414_v55, %s2384_s10 }
 0x1e4   : > { %v827_v35 = vpop.permute.xlu1 %826 }
 0x1e5   : > { %900 = vst.msk [vmem:[#allocation2 + $0xb8] sm:$0xff] %vm876_vm6, %v827_v35  ;;  %v825_v21 = vpop.permute.xlu0 %824 }
 0x1e6   : > { %899 = vst.msk [vmem:[#allocation2 + $0xb0] sm:$0xff] %vm876_vm6, %v825_v21  ;;  %707 = vrot.lane.b32.xlu1 %v3378_v39, %s2385_s11  ;;  %v1445_v21 = vrot.slane %v275_v60, 2 }
 0x1e7   : > { %705 = vrot.lane.b32.xlu0 %v3381_v41, %s2385_s11 }
 0x1e8   : > { %v958_v36 = vpop.permute.xlu1 %957 }
 0x1e9   : > { %1033 = vst.msk [vmem:[#allocation2 + $0xa8] sm:$0xff] %vm1011_vm7, %v958_v36  ;;  %v956_v16 = vpop.permute.xlu0 %955  ;;  %v1447_v36 = vrot.slane %v276_v14, 2 }
 0x1ea   : > { %1032 = vst.msk [vmem:[#allocation2 + $0xa0] sm:$0xff] %vm1011_vm7, %v956_v16  ;;  %711 = vrot.lane.b32.xlu1 %v3438_v12, %s2385_s11  ;;  %v1444_v16 = vrot.slane %v274_v62, 2 }
 0x1eb   : > { %709 = vrot.lane.b32.xlu0 %v3442_v13, %s2385_s11  ;;  %s2394_s11 = smov 96  }
 0x1ec   : > { %v962_v17 = vpop.permute.xlu1 %961 }
 0x1ed   : > { %1035 = vst.msk [vmem:[#allocation2 + $0xb8] sm:$0xff] %vm1011_vm7, %v962_v17  ;;  %v960_v18 = vpop.permute.xlu0 %959 }
 0x1ee   : > { %1034 = vst.msk [vmem:[#allocation2 + $0xb0] sm:$0xff] %vm1011_vm7, %v960_v18  ;;  %838 = vrot.lane.b32.xlu1 %v3121_v28, %s2386_s12 }
 0x1ef   : > { %836 = vrot.lane.b32.xlu0 %v3124_v29, %s2386_s12  ;;  %v2207_v19 = vpop.f32.mrb[4].mxu0 }
 0x1f0   : > { %v1756_v2 = vpop.f32.mrb[5].mxu0  ;;  %v1092_v22 = vpop.permute.xlu1 %1091  ;;  %v1765_v28 = vadd.f32 %v2207_v19, %v3332_v6  ;;  %v1448_v19 = vsel %vm568_vm2, %v1445_v21, %v1447_v36 }
 0x1f1   : > { %v1757_v27 = vadd.f32 %v3332_v6, %v1756_v2  ;;  %1167 = vst.msk [vmem:[#allocation2 + $0xa8] sm:$0xff] %vm1145_vm8, %v1092_v22  ;;  %v1090_v51 = vpop.permute.xlu0 %1089  ;;  %v2208_v52 = vpop.f32.mrb[6].mxu0  ;;  %v1446_v2 = vsel %vm568_vm2, %v1444_v16, %v1445_v21 }
 0x1f2   : > { %1166 = vst.msk [vmem:[#allocation2 + $0xa0] sm:$0xff] %vm1145_vm8, %v1090_v51  ;;  %v1759_v30 = vpop.f32.mrb[7].mxu0  ;;  %842 = vrot.lane.b32.xlu1 %v272_v1, %s2386_s12  ;;  %v1768_v38 = vadd.f32 %v2208_v52, %v3332_v6  ;;  %v1873_v41 = vmax.f32 %v1765_v28, 0.0 }
 0x1f3   : > { %v1871_v29 = vmax.f32 %v1757_v27, 0.0  ;;  %v1760_v32 = vadd.f32 %v3332_v6, %v1759_v30  ;;  %840 = vrot.lane.b32.xlu0 %v271_v23, %s2386_s12  ;;  %s2395_s12 = smov 127  }
 0x1f4   : > { %v1096_v58 = vpop.permute.xlu1 %1095  ;;  %v1874_v45 = vmax.f32 %v1768_v38, 0.0 }
 0x1f5   : > { %v1902_v37 = vadd.f32 %v3368_v34, %v1871_v29  ;;  %v1872_v39 = vmax.f32 %v1760_v32, 0.0  ;;  %1169 = vst.msk [vmem:[#allocation2 + $0xb8] sm:$0xff] %vm1145_vm8, %v1096_v58  ;;  %v1094_v40 = vpop.permute.xlu0 %1093  ;;  %v912_v34 = vsel %vm358_vm1, %v910_v57, %v911_v31 }
 0x1f6   : > { %1168 = vst.msk [vmem:[#allocation2 + $0xb0] sm:$0xff] %vm1145_vm8, %v1094_v40  ;;  %973 = vrot.lane.b32.xlu1 %v3411_v53, %s2387_s13 }
 0x1f7   : > { %v1903_v42 = vadd.f32 %v1902_v37, %v1872_v39  ;;  %971 = vrot.lane.b32.xlu0 %v3414_v55, %s2387_s13 }
 0x1f8   : > { %v1223_v44 = vpop.permute.xlu1 %1222 }
 0x1f9   : > { %v1904_v46 = vadd.f32 %v1903_v42, %v1873_v41  ;;  %1298 = vst.msk [vmem:[#allocation2 + $0xa8] sm:$0xff] %vm1276_vm9, %v1223_v44  ;;  %v1221_v47 = vpop.permute.xlu0 %1220 }
 0x1fa   : > { %1297 = vst.msk [vmem:[#allocation2 + $0xa0] sm:$0xff] %vm1276_vm9, %v1221_v47  ;;  %977 = vrot.lane.b32.xlu1 %v914_v43, %s2387_s13 }
 0x1fb   : > { %975 = vrot.lane.b32.xlu0 %v912_v34, %s2387_s13  ;;  %v3498_v63 = vadd.f32 %v1904_v46, %v1874_v45  ;;  %s215_s13 = sand.u32 1, %s2374_s19  }
 0x1fc   : > { %v1227_v0 = vpop.permute.xlu1 %1226 }
 0x1fd   : > { %1300 = vst.msk [vmem:[#allocation2 + $0xb8] sm:$0xff] %vm1276_vm9, %v1227_v0  ;;  %v1225_v53 = vpop.permute.xlu0 %1224 }
 0x1fe   : > { %1299 = vst.msk [vmem:[#allocation2 + $0xb0] sm:$0xff] %vm1276_vm9, %v1225_v53  ;;  %1107 = vrot.lane.b32.xlu1 %v3438_v12, %s2388_s14  ;;  %v1314_v12 = vsel %vm358_vm1, %v1311_v3, %v1313_v4 }
 0x1ff   : > { %1105 = vrot.lane.b32.xlu0 %v3442_v13, %s2388_s14  ;;  %v1312_v13 = vsel %vm358_vm1, %v1310_v5, %v1311_v3 }
 0x200   : > { %v1358_v55 = vpop.permute.xlu1 %1357 }
 0x201   : > { %1433 = vst.msk [vmem:[#allocation2 + $0xa8] sm:$0xff] %vm1411_vm10, %v1358_v55  ;;  %v1356_v48 = vpop.permute.xlu0 %1355 }
 0x202   : > { %1432 = vst.msk [vmem:[#allocation2 + $0xa0] sm:$0xff] %vm1411_vm10, %v1356_v48  ;;  %1111 = vrot.lane.b32.xlu1 %v1048_v54, %s2388_s14 }
 0x203   : > { %1109 = vrot.lane.b32.xlu0 %v1046_v56, %s2388_s14  ;;  %s216_s14 = scalar_lea.vmem [#allocation3], %s215_s13 }
 0x204   : > { %v1362_v49 = vpop.permute.xlu1 %1361 }
 0x205   : > { %1435 = vst.msk [vmem:[#allocation2 + $0xb8] sm:$0xff] %vm1411_vm10, %v1362_v49  ;;  %v1360_v59 = vpop.permute.xlu0 %1359 }
 0x206   : > { %1434 = vst.msk [vmem:[#allocation2 + $0xb0] sm:$0xff] %vm1411_vm10, %v1360_v59  ;;  %1238 = vrot.lane.b32.xlu1 %v272_v1, %s2389_s15 }
 0x207   : > { %1236 = vrot.lane.b32.xlu0 %v271_v23, %s2389_s15 }
 0x208   : > { %v1492_v61 = vpop.permute.xlu1 %1491 }
 0x209   : > { %1567 = vst.msk [vmem:[#allocation2 + $0xa8] sm:$0xff] %vm1545_vm11, %v1492_v61  ;;  %v1490_v15 = vpop.permute.xlu0 %1489 }
 0x20a   : > { %1566 = vst.msk [vmem:[#allocation2 + $0xa0] sm:$0xff] %vm1545_vm11, %v1490_v15  ;;  %1242 = vrot.lane.b32.xlu1 %v275_v60, %s2389_s15 }
 0x20b   : > { %1240 = vrot.lane.b32.xlu0 %v274_v62, %s2389_s15  ;;  %s2076_s15 = sshll.u32 %s216_s14, 4  ;;  %s3664_s15 = int_to_ptr.vmem [resolvable:$true] %s2076_s15 }
 0x20c   : > { %v490_v7 = vpop.permute.xlu1 %489  ;;  %s2320_s6 = scalar_lea.vmem %s3664_s15, 16 }
 0x20d   : > { %561 = vst.msk [vmem:[#allocation2 + $0xc8] sm:$0xff] %vm535_vm4, %v490_v7  ;;  %v488_v8 = vpop.permute.xlu0 %487  ;;  %p2321_p11 = scmp.ne.s32.totalorder %s3664_s15, %s2320_s6 }
 0x20e   : > { %560 = vst.msk [vmem:[#allocation2 + $0xc0] sm:$0xff] %vm535_vm4, %v488_v8  ;;  %1373 = vrot.lane.b32.xlu1 %v914_v43, %s2390_s16 }
 0x20f   : > { %1371 = vrot.lane.b32.xlu0 %v912_v34, %s2390_s16  ;;  %p2322_p12 = pnand %p2321_p11, %p2466_p5 }
 0x210   : > { %v1496_v9 = vpop.permute.xlu1 %1495  ;;  %v1599_v10 = vld [vmem:[#allocation2 + $0xa8] sm:$0xff] }
 0x211   : > { %1569 = vst.msk [vmem:[#allocation2 + $0xb8] sm:$0xff] %vm1545_vm11, %v1496_v9  ;;  %v1494_v11 = vpop.permute.xlu0 %1493  ;;  %v1598_v20 = vld [vmem:[#allocation2 + $0xa0] sm:$0xff]  ;;  %p2323_p13 = pneg %p2322_p12 }
 0x212   : > { %1568 = vst.msk [vmem:[#allocation2 + $0xb0] sm:$0xff] %vm1545_vm11, %v1494_v11  ;;  %1377 = vrot.lane.b32.xlu1 %v1314_v12, %s2390_s16  ;;  %v1620_v35 = vpack.c.bf16 %v1599_v10, %v1598_v20 }
 0x213   : > { %1375 = vrot.lane.b32.xlu0 %v1312_v13, %s2390_s16  ;;  %s2164_s16 = sshll.u32 %s2449_s22, 4  ;;  %s2324_s22 = sshll.u32 %s2397_s7, 4  ;;  %s2325_s22 = int_to_ptr.vmem [resolvable:$false] %s2324_s22 }
 0x214   : > { %2221 = vmatprep.mubr.msk.bf16.mxu0 %vm1653_vm12, %v1620_v35  ;;  %v494_v17 = vpop.permute.xlu1 %493  ;;  %s3669_s26 = scalar_lea.hbm %s3714_s5, %s2164_s16  ;;  %s2326_s8 = scalar_lea.vmem %s2325_s22, 32 }
 0x215   : > { %563 = vst.msk [vmem:[#allocation2 + $0xd8] sm:$0xff] %vm535_vm4, %v494_v17  ;;  %v492_v18 = vpop.permute.xlu0 %491  ;;  %p2327_p0 = scmp.lt.s32.totalorder %s3664_s15, %s2325_s22  ;;  %p2328_p1 = scmp.lt.s32.totalorder %s2326_s8, %s2320_s6 }
 0x216   : > { %562 = vst.msk [vmem:[#allocation2 + $0xd0] sm:$0xff] %vm535_vm4, %v492_v18  ;;  %1507 = vrot.lane.b32.xlu1 %v1048_v54, %s2391_s30 }
 0x217   : > { %1505 = vrot.lane.b32.xlu0 %v1046_v56, %s2391_s30  ;;  %p2329_p2 = por %p2328_p1, %p2327_p0 }
 0x218   : > { %v700_v1 = vpop.permute.xlu1 %699  ;;  %v1601_v22 = vld [vmem:[#allocation2 + $0xb8] sm:$0xff] }
 0x219   : > { %771 = vst.msk [vmem:[#allocation2 + $0xc8] sm:$0xff] %vm745_vm5, %v700_v1  ;;  %v698_v23 = vpop.permute.xlu0 %697  ;;  %v1600_v24 = vld [vmem:[#allocation2 + $0xb0] sm:$0xff]  ;;  %p2330_p3 = pnand %p2329_p2, %p2323_p13 }
 0x21a   : > { %770 = vst.msk [vmem:[#allocation2 + $0xc0] sm:$0xff] %vm745_vm5, %v698_v23  ;;  %1511 = vrot.lane.b32.xlu1 %v1448_v19, %s2391_s30  ;;  %v1621_v27 = vpack.c.bf16 %v1601_v22, %v1600_v24 }
 0x21b   : > { %1509 = vrot.lane.b32.xlu0 %v1446_v2, %s2391_s30  ;;  %s2064_s30 = scalar_lea.sflag [#allocation4], %s215_s13 }
 0x21c   : > { %2222 = vmatmul.mubr.msk.bf16.gmra.mrb[20].mxu0 %vm1653_vm12, %v1621_v27  ;;  %v704_v51 = vpop.permute.xlu1 %703 }
 0x21d   : > { %773 = vst.msk [vmem:[#allocation2 + $0xd8] sm:$0xff] %vm745_vm5, %v704_v51  ;;  %v702_v52 = vpop.permute.xlu0 %701 }
 0x21e   : > { %772 = vst.msk [vmem:[#allocation2 + $0xd0] sm:$0xff] %vm745_vm5, %v702_v52 }
 0x220   : > { %v831_v30 = vpop.permute.xlu1 %830 }
 0x221   : > { %902 = vst.msk [vmem:[#allocation2 + $0xc8] sm:$0xff] %vm876_vm6, %v831_v30  ;;  %v829_v31 = vpop.permute.xlu0 %828 }
 0x222   : > { %901 = vst.msk [vmem:[#allocation2 + $0xc0] sm:$0xff] %vm876_vm6, %v829_v31 }
 0x224   : > { %v835_v28 = vpop.permute.xlu1 %834 }
 0x225   : > { %904 = vst.msk [vmem:[#allocation2 + $0xd8] sm:$0xff] %vm876_vm6, %v835_v28  ;;  %v833_v29 = vpop.permute.xlu0 %832 }
 0x226   : > { %903 = vst.msk [vmem:[#allocation2 + $0xd0] sm:$0xff] %vm876_vm6, %v833_v29 }
 0x228   : > { %v966_v32 = vpop.permute.xlu1 %965 }
 0x229   : > { %1037 = vst.msk [vmem:[#allocation2 + $0xc8] sm:$0xff] %vm1011_vm7, %v966_v32  ;;  %v964_v33 = vpop.permute.xlu0 %963 }
 0x22a   : > { %1036 = vst.msk [vmem:[#allocation2 + $0xc0] sm:$0xff] %vm1011_vm7, %v964_v33 }
 0x22c   : > { %v970_v57 = vpop.permute.xlu1 %969 }
 0x22d   : > { %1039 = vst.msk [vmem:[#allocation2 + $0xd8] sm:$0xff] %vm1011_vm7, %v970_v57  ;;  %v968_v58 = vpop.permute.xlu0 %967 }
 0x22e   : > { %1038 = vst.msk [vmem:[#allocation2 + $0xd0] sm:$0xff] %vm1011_vm7, %v968_v58 }
 0x22f   : > { %v2211_v37 = vpop.f32.mrb[8].mxu0 }
 0x230   : > { %v1772_v38 = vpop.f32.mrb[9].mxu0  ;;  %v1100_v39 = vpop.permute.xlu1 %1099  ;;  %v1781_v44 = vadd.f32 %v2211_v37, %v3332_v6 }
 0x231   : > { %v1773_v40 = vadd.f32 %v3332_v6, %v1772_v38  ;;  %1171 = vst.msk [vmem:[#allocation2 + $0xc8] sm:$0xff] %vm1145_vm8, %v1100_v39  ;;  %v1098_v41 = vpop.permute.xlu0 %1097  ;;  %v2212_v42 = vpop.f32.mrb[10].mxu0 }
 0x232   : > { %1170 = vst.msk [vmem:[#allocation2 + $0xc0] sm:$0xff] %vm1145_vm8, %v1098_v41  ;;  %v1775_v43 = vpop.f32.mrb[11].mxu0  ;;  %v1784_v50 = vadd.f32 %v2212_v42, %v3332_v6  ;;  %v1877_v0 = vmax.f32 %v1781_v44, 0.0 }
 0x233   : > { %v1875_v34 = vmax.f32 %v1773_v40, 0.0  ;;  %v1776_v45 = vadd.f32 %v3332_v6, %v1775_v43 }
 0x234   : > { %v1104_v46 = vpop.permute.xlu1 %1103  ;;  %v1878_v55 = vmax.f32 %v1784_v50, 0.0 }
 0x235   : > { %v1906_v47 = vadd.f32 %v3498_v63, %v1875_v34  ;;  %v1876_v25 = vmax.f32 %v1776_v45, 0.0  ;;  %1173 = vst.msk [vmem:[#allocation2 + $0xd8] sm:$0xff] %vm1145_vm8, %v1104_v46  ;;  %v1102_v26 = vpop.permute.xlu0 %1101 }
 0x236   : > { %1172 = vst.msk [vmem:[#allocation2 + $0xd0] sm:$0xff] %vm1145_vm8, %v1102_v26 }
 0x237   : > { %v1907_v53 = vadd.f32 %v1906_v47, %v1876_v25 }
 0x238   : > { %v1231_v54 = vpop.permute.xlu1 %1230 }
 0x239   : > { %v1908_v56 = vadd.f32 %v1907_v53, %v1877_v0  ;;  %1302 = vst.msk [vmem:[#allocation2 + $0xc8] sm:$0xff] %vm1276_vm9, %v1231_v54  ;;  %v1229_v48 = vpop.permute.xlu0 %1228 }
 0x23a   : > { %1301 = vst.msk [vmem:[#allocation2 + $0xc0] sm:$0xff] %vm1276_vm9, %v1229_v48 }
 0x23b   : > { %v3566_v49 = vadd.f32 %v1908_v56, %v1878_v55 }
 0x23c   : > { %v1235_v63 = vpop.permute.xlu1 %1234 }
 0x23d   : > { %1304 = vst.msk [vmem:[#allocation2 + $0xd8] sm:$0xff] %vm1276_vm9, %v1235_v63  ;;  %v1233_v59 = vpop.permute.xlu0 %1232 }
 0x23e   : > { %1303 = vst.msk [vmem:[#allocation2 + $0xd0] sm:$0xff] %vm1276_vm9, %v1233_v59 }
 0x240   : > { %v1366_v60 = vpop.permute.xlu1 %1365 }
 0x241   : > { %1437 = vst.msk [vmem:[#allocation2 + $0xc8] sm:$0xff] %vm1411_vm10, %v1366_v60  ;;  %v1364_v61 = vpop.permute.xlu0 %1363 }
 0x242   : > { %1436 = vst.msk [vmem:[#allocation2 + $0xc0] sm:$0xff] %vm1411_vm10, %v1364_v61 }
 0x244   : > { %v1370_v62 = vpop.permute.xlu1 %1369 }
 0x245   : > { %1439 = vst.msk [vmem:[#allocation2 + $0xd8] sm:$0xff] %vm1411_vm10, %v1370_v62  ;;  %v1368_v14 = vpop.permute.xlu0 %1367 }
 0x246   : > { %1438 = vst.msk [vmem:[#allocation2 + $0xd0] sm:$0xff] %vm1411_vm10, %v1368_v14 }
 0x248   : > { %v1500_v15 = vpop.permute.xlu1 %1499 }
 0x249   : > { %1571 = vst.msk [vmem:[#allocation2 + $0xc8] sm:$0xff] %vm1545_vm11, %v1500_v15  ;;  %v1498_v3 = vpop.permute.xlu0 %1497 }
 0x24a   : > { %1570 = vst.msk [vmem:[#allocation2 + $0xc0] sm:$0xff] %vm1545_vm11, %v1498_v3 }
 0x24c   : > { %v498_v4 = vpop.permute.xlu1 %497 }
 0x24d   : > { %565 = vst.msk [vmem:[#allocation2 + $0xe8] sm:$0xff] %vm535_vm4, %v498_v4  ;;  %v496_v5 = vpop.permute.xlu0 %495 }
 0x24e   : > { %564 = vst.msk [vmem:[#allocation2 + $0xe0] sm:$0xff] %vm535_vm4, %v496_v5 }
 0x250   : > { %v1504_v7 = vpop.permute.xlu1 %1503  ;;  %v1603_v8 = vld [vmem:[#allocation2 + $0xc8] sm:$0xff] }
 0x251   : > { %1573 = vst.msk [vmem:[#allocation2 + $0xd8] sm:$0xff] %vm1545_vm11, %v1504_v7  ;;  %v1502_v12 = vpop.permute.xlu0 %1501  ;;  %v1602_v9 = vld [vmem:[#allocation2 + $0xc0] sm:$0xff] }
 0x252   : > { %1572 = vst.msk [vmem:[#allocation2 + $0xd0] sm:$0xff] %vm1545_vm11, %v1502_v12  ;;  %v1622_v13 = vpack.c.bf16 %v1603_v8, %v1602_v9 }
 0x254   : > { %2225 = vmatprep.mubr.msk.bf16.mxu0 %vm1653_vm12, %v1622_v13  ;;  %v502_v10 = vpop.permute.xlu1 %501 }
 0x255   : > { %567 = vst.msk [vmem:[#allocation2 + $0xf8] sm:$0xff] %vm535_vm4, %v502_v10  ;;  %v500_v11 = vpop.permute.xlu0 %499 }
 0x256   : > { %566 = vst.msk [vmem:[#allocation2 + $0xf0] sm:$0xff] %vm535_vm4, %v500_v11 }
 0x258   : > { %v708_v20 = vpop.permute.xlu1 %707  ;;  %v1605_v35 = vld [vmem:[#allocation2 + $0xd8] sm:$0xff] }
 0x259   : > { %775 = vst.msk [vmem:[#allocation2 + $0xe8] sm:$0xff] %vm745_vm5, %v708_v20  ;;  %v706_v21 = vpop.permute.xlu0 %705  ;;  %v1604_v36 = vld [vmem:[#allocation2 + $0xd0] sm:$0xff] }
 0x25a   : > { %774 = vst.msk [vmem:[#allocation2 + $0xe0] sm:$0xff] %vm745_vm5, %v706_v21  ;;  %v1623_v16 = vpack.c.bf16 %v1605_v35, %v1604_v36 }
 0x25c   : > { %2226 = vmatmul.mubr.msk.bf16.gmra.mrb[24].mxu0 %vm1653_vm12, %v1623_v16  ;;  %v712_v17 = vpop.permute.xlu1 %711 }
 0x25d   : > { %777 = vst.msk [vmem:[#allocation2 + $0xf8] sm:$0xff] %vm745_vm5, %v712_v17  ;;  %v710_v18 = vpop.permute.xlu0 %709  ;;  %v2312_v17 = vld [vmem:[%s3712_s3] sm:$0xff]  }
 0x25e   : > { %776 = vst.msk [vmem:[#allocation2 + $0xf0] sm:$0xff] %vm745_vm5, %v710_v18  ;;  %v2392_v18 = vmov 0.0  }
 0x25f   : > { %2233 = vmatprep.subr.bf16.mxu1 %v2392_v18  ;;  %2249 = vmatprep.mubr.msk.bf16.mxu1 %vm2393_vm13, %v2392_v18 }
 0x260   : > { %v839_v19 = vpop.permute.xlu1 %838  ;;  %2234 = vmatpush3.bf16.msra.mxu1 %v2312_v17 }
 0x261   : > { %906 = vst.msk [vmem:[#allocation2 + $0xe8] sm:$0xff] %vm876_vm6, %v839_v19  ;;  %v837_v1 = vpop.permute.xlu0 %836  ;;  %2235 = vmatprep.subr.bf16.mxu1 %v2392_v18 }
 0x262   : > { %905 = vst.msk [vmem:[#allocation2 + $0xe0] sm:$0xff] %vm876_vm6, %v837_v1  ;;  %v2313_v1 = vld [vmem:[%s3712_s3 + $0x8] sm:$0xff]  }
 0x264   : > { %v843_v2 = vpop.permute.xlu1 %842  ;;  %2236 = vmatpush3.bf16.msra.mxu1 %v2313_v1  ;;  %v1954_v1 = vld [vmem:[%s3713_s4] sm:$0x1] }
 0x265   : > { %908 = vst.msk [vmem:[#allocation2 + $0xf8] sm:$0xff] %vm876_vm6, %v843_v2  ;;  %v841_v22 = vpop.permute.xlu0 %840  ;;  %2237 = vmatprep.subr.bf16.mxu1 %v2392_v18 }
 0x266   : > { %907 = vst.msk [vmem:[#allocation2 + $0xf0] sm:$0xff] %vm876_vm6, %v841_v22 }
 0x268   : > { %v974_v23 = vpop.permute.xlu1 %973 }
 0x269   : > { %1041 = vst.msk [vmem:[#allocation2 + $0xe8] sm:$0xff] %vm1011_vm7, %v974_v23  ;;  %v972_v24 = vpop.permute.xlu0 %971  ;;  %v2314_v23 = vld [vmem:[%s3712_s3 + $0x10] sm:$0xff]  }
 0x26a   : > { %1040 = vst.msk [vmem:[#allocation2 + $0xe0] sm:$0xff] %vm1011_vm7, %v972_v24  ;;  %2238 = vmatpush3.bf16.msra.mxu1 %v2314_v23 }
 0x26b   : > { %2239 = vmatprep.subr.bf16.mxu1 %v2392_v18 }
 0x26c   : > { %v978_v27 = vpop.permute.xlu1 %977 }
 0x26d   : > { %1043 = vst.msk [vmem:[#allocation2 + $0xf8] sm:$0xff] %vm1011_vm7, %v978_v27  ;;  %v976_v51 = vpop.permute.xlu0 %975 }
 0x26e   : > { %1042 = vst.msk [vmem:[#allocation2 + $0xf0] sm:$0xff] %vm1011_vm7, %v976_v51 }
 0x26f   : > { %v2215_v52 = vpop.f32.mrb[12].mxu0 }
 0x270   : > { %v1788_v30 = vpop.f32.mrb[13].mxu0  ;;  %v1108_v31 = vpop.permute.xlu1 %1107  ;;  %v1797_v57 = vadd.f32 %v2215_v52, %v3332_v6 }
 0x271   : > { %v1789_v28 = vadd.f32 %v3332_v6, %v1788_v30  ;;  %1175 = vst.msk [vmem:[#allocation2 + $0xe8] sm:$0xff] %vm1145_vm8, %v1108_v31  ;;  %v1106_v29 = vpop.permute.xlu0 %1105  ;;  %v2216_v32 = vpop.f32.mrb[14].mxu0 }
 0x272   : > { %1174 = vst.msk [vmem:[#allocation2 + $0xe0] sm:$0xff] %vm1145_vm8, %v1106_v29  ;;  %v1791_v33 = vpop.f32.mrb[15].mxu0  ;;  %v1800_v40 = vadd.f32 %v2216_v32, %v3332_v6  ;;  %v1881_v43 = vmax.f32 %v1797_v57, 0.0 }
 0x273   : > { %v1879_v58 = vmax.f32 %v1789_v28, 0.0  ;;  %v1792_v37 = vadd.f32 %v3332_v6, %v1791_v33  ;;  %v2315_v28 = vld [vmem:[%s3712_s3 + $0x18] sm:$0xff]  }
 0x274   : > { %v1112_v38 = vpop.permute.xlu1 %1111  ;;  %v1882_v45 = vmax.f32 %v1800_v40, 0.0  ;;  %2240 = vmatpush3.bf16.msra.mxu1 %v2315_v28  ;;  %v2317_v40 = vld [vmem:[%s3712_s3 + $0x28] sm:$0xff]  }
 0x275   : > { %v1910_v39 = vadd.f32 %v3566_v49, %v1879_v58  ;;  %v1880_v41 = vmax.f32 %v1792_v37, 0.0  ;;  %1177 = vst.msk [vmem:[#allocation2 + $0xf8] sm:$0xff] %vm1145_vm8, %v1112_v38  ;;  %v1110_v42 = vpop.permute.xlu0 %1109  ;;  %2241 = vmatprep.subr.bf16.mxu1 %v2392_v18  ;;  %v2316_v37 = vld [vmem:[%s3712_s3 + $0x20] sm:$0xff]  }
 0x276   : > { %1176 = vst.msk [vmem:[#allocation2 + $0xf0] sm:$0xff] %vm1145_vm8, %v1110_v42  ;;  %v2318_v42 = vld [vmem:[%s3712_s3 + $0x30] sm:$0xff]  }
 0x277   : > { %v1911_v44 = vadd.f32 %v1910_v39, %v1880_v41 }
 0x278   : > { %v1239_v34 = vpop.permute.xlu1 %1238  ;;  %2242 = vmatpush3.bf16.msra.mxu1 %v2316_v37 }
 0x279   : > { %v1912_v46 = vadd.f32 %v1911_v44, %v1881_v43  ;;  %1306 = vst.msk [vmem:[#allocation2 + $0xe8] sm:$0xff] %vm1276_vm9, %v1239_v34  ;;  %v1237_v47 = vpop.permute.xlu0 %1236  ;;  %2243 = vmatprep.subr.bf16.mxu1 %v2392_v18  ;;  %v2319_v43 = vld [vmem:[%s3712_s3 + $0x38] sm:$0xff]  }
 0x27a   : > { %1305 = vst.msk [vmem:[#allocation2 + $0xe0] sm:$0xff] %vm1276_vm9, %v1237_v47 }
 0x27b   : > { %v1913_v50 = vadd.f32 %v1912_v46, %v1882_v45 }
 0x27c   : > { %v1243_v25 = vpop.permute.xlu1 %1242  ;;  %2244 = vmatpush3.bf16.msra.mxu1 %v2317_v40 }
 0x27d   : > { %1308 = vst.msk [vmem:[#allocation2 + $0xf8] sm:$0xff] %vm1276_vm9, %v1243_v25  ;;  %v1241_v26 = vpop.permute.xlu0 %1240  ;;  %2245 = vmatprep.subr.bf16.mxu1 %v2392_v18 }
 0x27e   : > { %1307 = vst.msk [vmem:[#allocation2 + $0xf0] sm:$0xff] %vm1276_vm9, %v1241_v26 }
 0x280   : > { %v1374_v0 = vpop.permute.xlu1 %1373  ;;  %2246 = vmatpush3.bf16.msra.mxu1 %v2318_v42 }
 0x281   : > { %1441 = vst.msk [vmem:[#allocation2 + $0xe8] sm:$0xff] %vm1411_vm10, %v1374_v0  ;;  %v1372_v53 = vpop.permute.xlu0 %1371  ;;  %2247 = vmatprep.subr.bf16.mxu1 %v2392_v18 }
 0x282   : > { %1440 = vst.msk [vmem:[#allocation2 + $0xe0] sm:$0xff] %vm1411_vm10, %v1372_v53 }
 0x284   : > { %v1378_v54 = vpop.permute.xlu1 %1377  ;;  %2248 = vmatpush3.bf16.msra.mxu1 %v2319_v43 }
 0x285   : > { %1443 = vst.msk [vmem:[#allocation2 + $0xf8] sm:$0xff] %vm1411_vm10, %v1378_v54  ;;  %v1376_v55 = vpop.permute.xlu0 %1375 }
 0x286   : > { %1442 = vst.msk [vmem:[#allocation2 + $0xf0] sm:$0xff] %vm1411_vm10, %v1376_v55 }
 0x288   : > { %v1508_v56 = vpop.permute.xlu1 %1507 }
 0x289   : > { %1575 = vst.msk [vmem:[#allocation2 + $0xe8] sm:$0xff] %vm1545_vm11, %v1508_v56  ;;  %v1506_v48 = vpop.permute.xlu0 %1505 }
 0x28a   : > { %1574 = vst.msk [vmem:[#allocation2 + $0xe0] sm:$0xff] %vm1545_vm11, %v1506_v48 }
 0x28c   : > { %v1512_v49 = vpop.permute.xlu1 %1511 }
 0x28d   : > { %1577 = vst.msk [vmem:[#allocation2 + $0xf8] sm:$0xff] %vm1545_vm11, %v1512_v49  ;;  %v1510_v63 = vpop.permute.xlu0 %1509 }
 0x28e   : > { %1576 = vst.msk [vmem:[#allocation2 + $0xf0] sm:$0xff] %vm1545_vm11, %v1510_v63 }
 0x290   : > { %v1607_v59 = vld [vmem:[#allocation2 + $0xe8] sm:$0xff] }
 0x291   : > { %v1606_v60 = vld [vmem:[#allocation2 + $0xe0] sm:$0xff] }
 0x292   : > { %v1624_v61 = vpack.c.bf16 %v1607_v59, %v1606_v60 }
 0x294   : > { %2229 = vmatprep.mubr.msk.bf16.mxu0 %vm1653_vm12, %v1624_v61  ;;  %v1609_v62 = vld [vmem:[#allocation2 + $0xf8] sm:$0xff] }
 0x295   : > { %v1608_v14 = vld [vmem:[#allocation2 + $0xf0] sm:$0xff] }
 0x296   : > { %v1625_v15 = vpack.c.bf16 %v1609_v62, %v1608_v14 }
 0x298   : > { %2230 = vmatmul.mubr.msk.bf16.gmra.mrb[28].mxu0 %vm1653_vm12, %v1625_v15 }
 0x2af   : > { %v2219_v3 = vpop.f32.mrb[16].mxu0 }
 0x2b0   : > { %v1804_v4 = vpop.f32.mrb[17].mxu0  ;;  %v1813_v12 = vadd.f32 %v2219_v3, %v3332_v6 }
 0x2b1   : > { %v1805_v5 = vadd.f32 %v3332_v6, %v1804_v4  ;;  %v2220_v7 = vpop.f32.mrb[18].mxu0 }
 0x2b2   : > { %v1807_v8 = vpop.f32.mrb[19].mxu0  ;;  %v1816_v11 = vadd.f32 %v2220_v7, %v3332_v6  ;;  %v1885_v35 = vmax.f32 %v1813_v12, 0.0 }
 0x2b3   : > { %v1883_v9 = vmax.f32 %v1805_v5, 0.0  ;;  %v1808_v13 = vadd.f32 %v3332_v6, %v1807_v8 }
 0x2b4   : > { %v1886_v36 = vmax.f32 %v1816_v11, 0.0 }
 0x2b5   : > { %v1914_v10 = vadd.f32 %v1913_v50, %v1883_v9  ;;  %v1884_v20 = vmax.f32 %v1808_v13, 0.0 }
 0x2b7   : > { %v1915_v21 = vadd.f32 %v1914_v10, %v1884_v20 }
 0x2b9   : > { %v1916_v16 = vadd.f32 %v1915_v21, %v1885_v35 }
 0x2bb   : > { %v1917_v19 = vadd.f32 %v1916_v16, %v1886_v36 }
 0x2ef   : > { %v2223_v2 = vpop.f32.mrb[20].mxu0 }
 0x2f0   : > { %v1820_v22 = vpop.f32.mrb[21].mxu0  ;;  %v1829_v52 = vadd.f32 %v2223_v2, %v3332_v6 }
 0x2f1   : > { %v1821_v24 = vadd.f32 %v3332_v6, %v1820_v22  ;;  %v2224_v27 = vpop.f32.mrb[22].mxu0 }
 0x2f2   : > { %v1823_v51 = vpop.f32.mrb[23].mxu0  ;;  %v1832_v32 = vadd.f32 %v2224_v27, %v3332_v6  ;;  %v1889_v57 = vmax.f32 %v1829_v52, 0.0 }
 0x2f3   : > { %v1887_v30 = vmax.f32 %v1821_v24, 0.0  ;;  %v1824_v31 = vadd.f32 %v3332_v6, %v1823_v51 }
 0x2f4   : > { %v1890_v38 = vmax.f32 %v1832_v32, 0.0 }
 0x2f5   : > { %v1918_v29 = vadd.f32 %v1917_v19, %v1887_v30  ;;  %v1888_v33 = vmax.f32 %v1824_v31, 0.0  ;;  %v2396_v31 = vmov 0  }
 0x2f6   : > { %2307 = vset.pattern.permute.xlu1 %v2396_v31  ;;  %2308 = vset.pattern.permute.xlu0 %v2396_v31 }
 0x2f7   : > { %v1919_v58 = vadd.f32 %v1918_v29, %v1888_v33 }
 0x2f9   : > { %v1920_v39 = vadd.f32 %v1919_v58, %v1889_v57 }
 0x2fb   : > { %v1921_v41 = vadd.f32 %v1920_v39, %v1890_v38 }
 0x32f   : > { %v2227_v44 = vpop.f32.mrb[24].mxu0 }
 0x330   : > { %v1836_v34 = vpop.f32.mrb[25].mxu0  ;;  %v1845_v50 = vadd.f32 %v2227_v44, %v3332_v6 }
 0x331   : > { %v1837_v45 = vadd.f32 %v3332_v6, %v1836_v34  ;;  %v2228_v46 = vpop.f32.mrb[26].mxu0 }
 0x332   : > { %v1839_v47 = vpop.f32.mrb[27].mxu0  ;;  %v1848_v53 = vadd.f32 %v2228_v46, %v3332_v6  ;;  %v1893_v55 = vmax.f32 %v1845_v50, 0.0 }
 0x333   : > { %v1891_v25 = vmax.f32 %v1837_v45, 0.0  ;;  %v1840_v26 = vadd.f32 %v3332_v6, %v1839_v47 }
 0x334   : > { %v1894_v48 = vmax.f32 %v1848_v53, 0.0 }
 0x335   : > { %v1922_v0 = vadd.f32 %v1921_v41, %v1891_v25  ;;  %v1892_v54 = vmax.f32 %v1840_v26, 0.0 }
 0x337   : > { %v1923_v56 = vadd.f32 %v1922_v0, %v1892_v54 }
 0x339   : > { %v1924_v49 = vadd.f32 %v1923_v56, %v1893_v55 }
 0x33b   : > { %v1925_v63 = vadd.f32 %v1924_v49, %v1894_v48 }
 0x36b   : > { %v2231_v59 = vpop.f32.mrb[28].mxu0 }
 0x36c   : > { %v1852_v60 = vpop.f32.mrb[29].mxu0  ;;  %v1861_v15 = vadd.f32 %v2231_v59, %v3332_v6 }
 0x36d   : > { %v1853_v61 = vadd.f32 %v3332_v6, %v1852_v60  ;;  %v2232_v62 = vpop.f32.mrb[30].mxu0 }
 0x36e   : > { %v1855_v14 = vpop.f32.mrb[31].mxu0  ;;  %v1864_v7 = vadd.f32 %v2232_v62, %v3332_v6  ;;  %v1897_v12 = vmax.f32 %v1861_v15, 0.0 }
 0x36f   : > { %v1895_v3 = vmax.f32 %v1853_v61, 0.0  ;;  %v1856_v4 = vadd.f32 %v3332_v6, %v1855_v14 }
 0x370   : > { %v1898_v13 = vmax.f32 %v1864_v7, 0.0 }
 0x371   : > { %v1926_v5 = vadd.f32 %v1925_v63, %v1895_v3  ;;  %v1896_v8 = vmax.f32 %v1856_v4, 0.0 }
 0x373   : > { %v1927_v9 = vadd.f32 %v1926_v5, %v1896_v8 }
 0x375   : > { %v1928_v10 = vadd.f32 %v1927_v9, %v1897_v12 }
 0x377   : > { %v1929_v11 = vadd.f32 %v1928_v10, %v1898_v13 }
 0x379   : > { %v1930_v20 = vrot.slane %v1929_v11, 4 }
 0x37b   : > { %v1931_v35 = vadd.f32 %v1930_v20, %v1929_v11 }
 0x37d   : > { %v1932_v21 = vrot.slane %v1931_v35, 2 }
 0x37f   : > { %v1933_v36 = vadd.f32 %v1932_v21, %v1931_v35 }
 0x381   : > { %v1934_v16 = vrot.slane %v1933_v36, 1 }
 0x383   : > { %v1935_v17 = vadd.f32 %v1934_v16, %v1933_v36 }
 0x385   : > { %v1936_v18 = vmul.f32 0.00390625, %v1935_v17 }
 0x387   : > { %v1937_v19 = vpack.c.bf16 %v1936_v18, %v1936_v18 }
 0x389   : > { %2250 = vmatmul.mubr.bf16.vlgmr.msra.gmra.mrb[0].mxu1 %v1937_v19 }
 0x45c   : > { %v2037_v6 = vpop.f32.mrb[0].mxu1 }
 0x45d   : > { %v2038_v2 = vadd.f32 %v2037_v6, %v1954_v1  ;;  %v2251_v22 = vpop.f32.mrb[1].mxu1 }
 0x45e   : > { %v2040_v23 = vpop.f32.mrb[2].mxu1 }
 0x45f   : > { %2044 = vrot.lane.b32.xlu0 %v2038_v2, %s2394_s11  ;;  %v2252_v24 = vpop.f32.mrb[3].mxu1 }
 0x4d1   : > { %v2045_v27 = vpop.permute.xlu0 %2044 }
 0x4d2   : > { %v2047_v51 = vmul.f32 %v2045_v27, %v2038_v2 }
 0x4d4   : > { %2049 = vrot.lane.b32.xlu1 %v2047_v51, %s2395_s12 }
 0x546   : > { %v2050_v52 = vpop.permute.xlu1 %2049 }
 0x547   : > { %v2053_v30 = vsel %vm2052_vm14, %v2050_v52, 0.0 }
 0x548   : > { %2054 = vadd.xlane.f32.xlu0 %v2053_v30 }
 0x5d5   : > { %v2055_v28 = vpop.xlane.xlu0 %2054 }
 0x5d6   : > { %v2056_v29 = vadd.f32 %v2055_v28, %v2038_v2 }
 0x5d8   : > { %2059 = vperm.xlu1 %2307, %v2056_v29  }
 0x657   : > { %v2060_v32 = vpop.permute.xlu1 %2059 }
 0x658   : > { %2062 = vst [vmem:[%s216_s14] sm:$0x1] %v2060_v32 }
 0x659   : > { %2333 = shalt.err (!%p2330_p3)
}
 0x65a   : > { %s2334_s17 = scalar_lea.hbm %s3669_s26, 16  ;;  %s2338_s11 = scalar_lea.hbm %s3714_s5, 32 }
 0x65b   : > { %p2335_p4 = scmp.ne.s32.totalorder %s3669_s26, %s2334_s17  ;;  %p2339_p9 = scmp.lt.u32.totalorder %s3669_s26, %s3714_s5 }
 0x65c   : > { %p2340_p10 = scmp.lt.u32.totalorder %s2338_s11, %s2334_s17  ;;  %p2342_p12 = scmp.lt.u32.totalorder %s2334_s17, %s3669_s26 }
 0x65d   : > { %p2336_p7 = pnand %p2335_p4, %p2466_p5 }
 0x65e   : > { %p2341_p11 = por %p2340_p10, %p2339_p9 }
 0x65f   : > { %p2337_p8 = pneg %p2336_p7 }
 0x660   : > { %p2343_p13 = por %p2342_p12, %p2341_p11 }
 0x662   : > { %p2344_p0 = pnand %p2343_p13, %p2337_p8 }
 0x664   : > { %2347 = shalt.err (!%p2344_p0)
}
 0x665   : > { %2255 = dma.vmem_to_hbm [thread:$0]  (%p2466_p5), %s3664_s15, 16, %s3669_s26, %s2064_s30  }
 0x666 PF: > { %p2261_p1 = scmp.ge.s32.totalorder %s2382_s21, 2  ;;  %s2088_s14 = sand.u32 1, %s2370_s18  }
 0x667   : > { %s2089_s16 = scalar_lea.sflag [#allocation4], %s2088_s14 }
 0x668   : > { %p2258_p2 = pnand %p2261_p1, %p2470_p6 }
 0x66a   : > { %2365 = dma.done.wait (!%p2258_p2), %s2089_s16, 16  }
 0x66b   : > { %2367 = vsyncadd (!%p2258_p2), %s2089_s16, 4294967280  ;;  %p15_p3 = scmp.ge.s32.totalorder %s2453_s24, 4   ;;  %s3717_s18 = smov %s2374_s19 }
 0x66c   : > { %s3718_s19 = smov %s2378_s20  ;;  %s3719_s20 = smov %s2464_s27 }
 0x66d   : > { %s3720_s21 = smov %s2453_s24  ;;  %17 = sbr.rel (!%p15_p3) target bundleno = 3 (0x3), region = 75 }
 0x674   :  { %2093 = vsyncpa [#allocation4], 1 }
 0x675   :  { %2095 = vsyncpa [#allocation4 + $0x1], 1 }

</bundles_post_ra>
